<compile_context>
chip_gen: v7x
topology: tpu7x:2x2x1
jax: 0.10.0
libtpu: 0.0.40
codegen_flags: <defaults>
</compile_context>

<pallas_src>
import functools

import jax
import jax.numpy as jnp
from jax import lax
from jax.experimental import pallas as pl
from jax.experimental.pallas import tpu as pltpu

DEFAULT_B_BLK = 16   # bf16 sublane packing is (16, 128)
MAX_T_BLK = 32       # timesteps folded into one grid step (VMEM-friendly)
NEG_BIG = -1e30      # bias padding: padded logit lanes never win the softmax


def rnn_seq_kernel(x_ref, h0_ref, w_ref, b_ref, out_ref, hfin_ref, h_carry,
                   *, input_size, hidden_size, t_blk):
    """One grid point = (batch block, block of t_blk timesteps).

    x_ref:   [T_BLK, B_BLK, I]     bf16  inputs for this time block
    h0_ref:  [B_BLK, H]            f32   initial hidden (read at tb == 0)
    w_ref:   [I+H, H+O_pad]        bf16  fused (i2h | padded i2o) weight, resident
    b_ref:   [1, H+O_pad]          f32   fused bias (padded logit cols = NEG_BIG)
    out_ref: [T_BLK, B_BLK, O_pad] bf16  log-probs (lane-dense, padded)
    hfin_ref:[B_BLK, H]            f32   final hidden (written at last time block)
    h_carry: [B_BLK, H]            f32   VMEM scratch carrying h across time blocks
    """
    tb = pl.program_id(1)
    n_tb = pl.num_programs(1)

    @pl.when(tb == 0)
    def _():
        h_carry[...] = h0_ref[...].astype(jnp.float32)

    # Loop-invariant loads hoisted out of the unrolled time loop.
    w_x = w_ref[:input_size, :]          # [I, H+O_pad] bf16
    w_h = w_ref[input_size:, :]          # [H, H+O_pad] bf16
    bias = b_ref[...]                    # [1, H+O_pad] f32
    # Chip-specific follow-up (v6e/v7x): the fused 192x256 bf16 weight fits a
    # single MXU push — pltpu.matmul_push_rhs once + matmul_acc_lhs per step
    # would make W MXU-resident across the loop.  Kept portable (jnp.dot) here.

    def step(i, h):
        x_bf = x_ref[i]                                  # [B_BLK, I] bf16
        h_bf = h.astype(jnp.bfloat16)                    # [B_BLK, H] bf16
        # Fused i2h|i2o matmul, split over the (x, h) concat (no concat needed).
        y = jnp.dot(x_bf, w_x, preferred_element_type=jnp.float32)
        y = y + jnp.dot(h_bf, w_h, preferred_element_type=jnp.float32)
        y = y + bias                                     # f32 bias add
        new_h = y[:, :hidden_size]                       # [B_BLK, H]      (i2h)
        logits = y[:, hidden_size:]                      # [B_BLK, O_pad]  (i2o)
        # log_softmax along dim=1 (numerically stable, f32; cast at the store).
        m = jnp.max(logits, axis=1, keepdims=True)
        shifted = logits - m
        lse = jnp.log(jnp.sum(jnp.exp(shifted), axis=1, keepdims=True))
        out_ref[i] = (shifted - lse).astype(out_ref.dtype)
        return new_h

    h_final = lax.fori_loop(0, t_blk, step, h_carry[...], unroll=True)
    h_carry[...] = h_final                               # recurrence stays on-chip

    @pl.when(tb == n_tb - 1)
    def _():
        hfin_ref[...] = h_carry[...]


def prepare_fused_params(w_i2h, b_i2h, w_i2o, b_i2o):
    """Fuse i2h / i2o into one lane-padded weight + bias.

    w_* are stored TRANSPOSED vs torch ([in_features, out_features]);
    b_* are [1, out_features].  Returns (w_fused bf16 [I+H, H+O_pad],
    b_fused f32 [1, H+O_pad]).
    """
    ih = w_i2h.shape[0]
    o = w_i2o.shape[1]
    o_pad = max(128, ((o + 127) // 128) * 128)           # lane-dense logits
    w_o = jnp.zeros((ih, o_pad), jnp.float32).at[:, :o].set(w_i2o)
    b_o = jnp.full((1, o_pad), NEG_BIG, jnp.float32).at[:, :o].set(b_i2o)
    w_fused = jnp.concatenate([w_i2h, w_o], axis=1).astype(jnp.bfloat16)
    b_fused = jnp.concatenate([b_i2h, b_o], axis=1).astype(jnp.float32)
    return w_fused, b_fused


def _pick_t_blk(T, max_t_blk=MAX_T_BLK):
    """Largest divisor of T that is <= max_t_blk (avoids padding the time axis,
    which would corrupt the recurrent hidden state)."""
    for cand in range(min(T, max_t_blk), 0, -1):
        if T % cand == 0:
            return cand
    return 1


def rnn_sequence(xs, h0, w_fused, b_fused, *, output_size, b_blk=DEFAULT_B_BLK):
    """Run the RNN cell over a sequence inside one pallas_call.

    xs: [T, B, I] f32, h0: [B, H] f32.
    Returns (log_probs [T, B, O] f32, h_final [B, H] f32).
    """
    T, B, I = xs.shape
    H = h0.shape[1]
    IH, HO = w_fused.shape
    assert IH == I + H
    o_pad = HO - H
    # Keep the new_h / logits split and the W row split on tile boundaries
    # (no per-step XLU relayouts inside the hot loop).
    assert H % 128 == 0, "hidden_size must be a multiple of 128 lanes"
    assert o_pad % 128 == 0
    assert I % 16 == 0, "input_size must be a multiple of the bf16 sublane tile"

    # Pad batch to a multiple of the batch tile.
    pad = (-B) % b_blk
    if pad:
        xs = jnp.pad(xs, ((0, 0), (0, pad), (0, 0)))
        h0 = jnp.pad(h0, ((0, pad), (0, 0)))
    Bp = B + pad

    t_blk = _pick_t_blk(T)

    xs_bf = xs.astype(jnp.bfloat16)
    h0_f32 = h0.astype(jnp.float32)

    kernel = functools.partial(rnn_seq_kernel, input_size=I, hidden_size=H,
                               t_blk=t_blk)

    # Advisory cost hint so XLA schedules the surrounding pad/cast/slice sanely.
    flops = 2 * T * Bp * IH * HO + 6 * T * Bp * HO
    transcendentals = T * Bp * (o_pad + 1)               # exp + log per row
    bytes_accessed = (xs_bf.size * 2 + T * Bp * o_pad * 2 +   # x read, out write (bf16)
                      w_fused.size * 2 + b_fused.size * 4 +
                      2 * Bp * H * 4)                          # h0 read + h_final write

    out_pad, h_final = pl.pallas_call(
        kernel,
        out_shape=(
            jax.ShapeDtypeStruct((T, Bp, o_pad), jnp.bfloat16),   # bf16 writeback
            jax.ShapeDtypeStruct((Bp, H), jnp.float32),
        ),
        grid=(Bp // b_blk, T // t_blk),
        in_specs=[
            pl.BlockSpec((t_blk, b_blk, I), lambda b, t: (t, b, 0)),  # x time block
            pl.BlockSpec((b_blk, H), lambda b, t: (b, 0)),            # h0 per batch block
            pl.BlockSpec((IH, HO), lambda b, t: (0, 0)),              # fused W (VMEM-resident)
            pl.BlockSpec((1, HO), lambda b, t: (0, 0)),               # fused bias (resident)
        ],
        out_specs=(
            pl.BlockSpec((t_blk, b_blk, o_pad), lambda b, t: (t, b, 0)),
            pl.BlockSpec((b_blk, H), lambda b, t: (b, 0)),
        ),
        scratch_shapes=[pltpu.VMEM((b_blk, H), jnp.float32)],         # hidden carry
        compiler_params=pltpu.CompilerParams(
            dimension_semantics=("parallel", "arbitrary")),
        cost_estimate=pl.CostEstimate(flops=flops,
                                      transcendentals=transcendentals,
                                      bytes_accessed=bytes_accessed),
    )(xs_bf, h0_f32, w_fused, b_fused)

    # Padded lanes hold ~ -1e30; never consume out_pad unsliced downstream.
    return out_pad[:, :B, :output_size].astype(jnp.float32), h_final[:B]


def rnn_step(x, h, w_fused, b_fused, *, output_size, b_blk=DEFAULT_B_BLK):
    """Single step == the PyTorch module's forward(input, hidden)."""
    out, h_new = rnn_sequence(x[None], h, w_fused, b_fused,
                              output_size=output_size, b_blk=b_blk)
    return out[0], h_new


if __name__ == "__main__":
    n_hidden = 128        # matches the reference script
    input_size = 64
    output_size = 16
    batch = 16            # batched independent sequences -> real MXU occupancy
    seq_len = 8

    key = jax.random.PRNGKey(0)
    k_x, k_w1, k_b1, k_w2, k_b2 = jax.random.split(key, 5)

    bound = 1.0 / ((input_size + n_hidden) ** 0.5)
    w_i2h = jax.random.uniform(k_w1, (input_size + n_hidden, n_hidden),
                               jnp.float32, -bound, bound)
    b_i2h = jax.random.uniform(k_b1, (1, n_hidden), jnp.float32, -bound, bound)
    w_i2o = jax.random.uniform(k_w2, (input_size + n_hidden, output_size),
                               jnp.float32, -bound, bound)
    b_i2o = jax.random.uniform(k_b2, (1, output_size), jnp.float32, -bound, bound)

    xs = jax.random.normal(k_x, (seq_len, batch, input_size), jnp.float32)
    h0 = jnp.zeros((batch, n_hidden), jnp.float32)   # RNN.initHidden()

    w_fused, b_fused = prepare_fused_params(w_i2h, b_i2h, w_i2o, b_i2o)

    log_probs, h_final = rnn_sequence(xs, h0, w_fused, b_fused,
                                      output_size=output_size)
    jax.block_until_ready((log_probs, h_final))

    # Pure-JAX reference with the same bf16-operand / f32-accumulate arithmetic.
    def ref_step(h, x):
        comb = jnp.concatenate([x, h], axis=1).astype(jnp.bfloat16)
        new_h = jnp.dot(comb, w_i2h.astype(jnp.bfloat16),
                        preferred_element_type=jnp.float32) + b_i2h
        logits = jnp.dot(comb, w_i2o.astype(jnp.bfloat16),
                         preferred_element_type=jnp.float32) + b_i2o
        return new_h, jax.nn.log_softmax(logits, axis=1)

    h_ref, lp_ref = jax.lax.scan(ref_step, h0, xs)

    assert log_probs.shape == (seq_len, batch, output_size)
    assert h_final.shape == (batch, n_hidden)
    row_sums = jnp.sum(jnp.exp(log_probs), axis=-1)
    # log-probs travel through HBM as bf16 -> slightly looser tolerances.
    assert bool(jnp.all(jnp.abs(row_sums - 1.0) < 2e-2))
    assert bool(jnp.allclose(log_probs, lp_ref, atol=2e-2, rtol=2e-2))
    assert bool(jnp.allclose(h_final, h_ref, atol=1e-2, rtol=1e-2))

    # Single-step path (the module's forward signature) reuses the same kernel.
    step_out, step_h = rnn_step(xs[0], h0, w_fused, b_fused,
                                output_size=output_size)
    jax.block_until_ready((step_out, step_h))
    assert bool(jnp.allclose(step_out, lp_ref[0], atol=2e-2, rtol=2e-2))

    print("KERNEL_OK")
</pallas_src>

<mosaic_0001>
module attributes {stable_mosaic.version = 11 : i64} {
  func.func @rnn_seq_kernel(%arg0: i32, %arg1: i32, %arg2: memref<8x16x64xbf16, #tpu.memory_space<vmem>>, %arg3: memref<16x128xf32, #tpu.memory_space<vmem>>, %arg4: memref<192x256xbf16, #tpu.memory_space<vmem>>, %arg5: memref<1x256xf32, #tpu.memory_space<vmem>>, %arg6: memref<8x16x128xbf16, #tpu.memory_space<vmem>>, %arg7: memref<16x128xf32, #tpu.memory_space<vmem>>, %arg8: memref<16x128xf32, #tpu.memory_space<vmem>>) attributes {dimension_semantics = [#tpu.dimension_semantics<parallel>, #tpu.dimension_semantics<arbitrary>], iteration_bounds = array<i64: 1, 1>, scalar_prefetch = 0 : i64, scratch_operands = 1 : i64, tpu.core_type = #tpu.core_type<tc>, window_params = [{transform_indices = @transform_0, window_bounds = array<i64: 8, 16, 64>}, {transform_indices = @transform_1, window_bounds = array<i64: 16, 128>}, {pipeline_mode = #tpu.pipeline_mode<synchronous>, transform_indices = @transform_2, window_bounds = array<i64: 192, 256>}, {pipeline_mode = #tpu.pipeline_mode<synchronous>, transform_indices = @transform_3, window_bounds = array<i64: 1, 256>}, {transform_indices = @transform_4, window_bounds = array<i64: 8, 16, 128>}, {transform_indices = @transform_5, window_bounds = array<i64: 16, 128>}]} {
    %c0_i32 = arith.constant 0 : i32
    %0 = arith.cmpi eq, %arg1, %c0_i32 : i32
    %1 = arith.extui %0 : i1 to i32
    %c0_i32_0 = arith.constant 0 : i32
    %2 = arith.cmpi ne, %1, %c0_i32_0 : i32
    scf.if %2 {
      %c0_75 = arith.constant 0 : index
      %c0_76 = arith.constant 0 : index
      %219 = vector.load %arg3[%c0_75, %c0_76] : memref<16x128xf32, #tpu.memory_space<vmem>>, vector<16x128xf32>
      %c0_77 = arith.constant 0 : index
      %c0_78 = arith.constant 0 : index
      %220 = vector.load %arg8[%c0_77, %c0_78] : memref<16x128xf32, #tpu.memory_space<vmem>>, vector<16x128xf32>
      tpu.vector_store %arg8[%c0_77, %c0_78], %219 {strides = array<i32>} : memref<16x128xf32, #tpu.memory_space<vmem>>, vector<16x128xf32>,
    } else {
    }
    %c0 = arith.constant 0 : index
    %c0_1 = arith.constant 0 : index
    %3 = vector.load %arg4[%c0, %c0_1] : memref<192x256xbf16, #tpu.memory_space<vmem>>, vector<64x256xbf16>
    %c64 = arith.constant 64 : index
    %c0_2 = arith.constant 0 : index
    %4 = vector.load %arg4[%c64, %c0_2] : memref<192x256xbf16, #tpu.memory_space<vmem>>, vector<128x256xbf16>
    %c0_3 = arith.constant 0 : index
    %c0_4 = arith.constant 0 : index
    %5 = vector.load %arg5[%c0_3, %c0_4] : memref<1x256xf32, #tpu.memory_space<vmem>>, vector<1x256xf32>
    %c0_5 = arith.constant 0 : index
    %c0_6 = arith.constant 0 : index
    %6 = vector.load %arg8[%c0_5, %c0_6] : memref<16x128xf32, #tpu.memory_space<vmem>>, vector<16x128xf32>
    %c0_i32_7 = arith.constant 0 : i32
    %7 = arith.index_cast %c0_i32_7 : i32 to index
    %c0_8 = arith.constant 0 : index
    %c0_9 = arith.constant 0 : index
    %8 = vector.load %arg2[%7, %c0_8, %c0_9] : memref<8x16x64xbf16, #tpu.memory_space<vmem>>, vector<1x16x64xbf16>
    %9 = vector.shape_cast %8 : vector<1x16x64xbf16> to vector<16x64xbf16>
    %10 = arith.truncf %6 : vector<16x128xf32> to vector<16x128xbf16>
    %cst = arith.constant dense<0.000000e+00> : vector<16x256xf32>
    %11 = tpu.matmul %9, %3, %cst {dimension_numbers = #tpu.dot_dimension_numbers<[1], [0], [0], [1], [0, 0, 1, 1], [], []>} : vector<16x64xbf16>, vector<64x256xbf16>, vector<16x256xf32> -> vector<16x256xf32>
    %cst_10 = arith.constant dense<0.000000e+00> : vector<16x256xf32>
    %12 = tpu.matmul %10, %4, %cst_10 {dimension_numbers = #tpu.dot_dimension_numbers<[1], [0], [0], [1], [0, 0, 1, 1], [], []>} : vector<16x128xbf16>, vector<128x256xbf16>, vector<16x256xf32> -> vector<16x256xf32>
    %13 = arith.addf %11, %12 : vector<16x256xf32>
    %14 = vector.broadcast %5 : vector<1x256xf32> to vector<16x256xf32>
    %15 = arith.addf %13, %14 : vector<16x256xf32>
    %16 = vector.extract_strided_slice %15 {offsets = [0, 0], sizes = [16, 128], strides = [1, 1]} : vector<16x256xf32> to vector<16x128xf32>
    %17 = vector.extract_strided_slice %15 {offsets = [0, 128], sizes = [16, 128], strides = [1, 1]} : vector<16x256xf32> to vector<16x128xf32>
    %cst_11 = arith.constant dense<0xFF800000> : vector<16xf32>
    %18 = vector.multi_reduction <maximumf>, %17, %cst_11 [1] : vector<16x128xf32> to vector<16xf32>
    %19 = vector.shape_cast %18 : vector<16xf32> to vector<16x1xf32>
    %20 = vector.broadcast %19 : vector<16x1xf32> to vector<16x128xf32>
    %21 = arith.subf %17, %20 : vector<16x128xf32>
    %22 = math.exp %21 : vector<16x128xf32>
    %cst_12 = arith.constant dense<0.000000e+00> : vector<16xf32>
    %23 = vector.multi_reduction <add>, %22, %cst_12 [1] : vector<16x128xf32> to vector<16xf32>
    %24 = vector.shape_cast %23 : vector<16xf32> to vector<16x1xf32>
    %25 = math.log %24 : vector<16x1xf32>
    %26 = vector.broadcast %25 : vector<16x1xf32> to vector<16x128xf32>
    %27 = arith.subf %21, %26 : vector<16x128xf32>
    %28 = arith.truncf %27 : vector<16x128xf32> to vector<16x128xbf16>
    %29 = arith.index_cast %c0_i32_7 : i32 to index
    %c0_13 = arith.constant 0 : index
    %c0_14 = arith.constant 0 : index
    %30 = vector.load %arg6[%29, %c0_13, %c0_14] : memref<8x16x128xbf16, #tpu.memory_space<vmem>>, vector<1x16x128xbf16>
    %31 = vector.shape_cast %30 : vector<1x16x128xbf16> to vector<16x128xbf16>
    %32 = vector.shape_cast %28 : vector<16x128xbf16> to vector<1x16x128xbf16>
    tpu.vector_store %arg6[%29, %c0_13, %c0_14], %32 {strides = array<i32>} : memref<8x16x128xbf16, #tpu.memory_space<vmem>>, vector<1x16x128xbf16>,
    %c1_i32 = arith.constant 1 : i32
    %33 = arith.index_cast %c1_i32 : i32 to index
    %c0_15 = arith.constant 0 : index
    %c0_16 = arith.constant 0 : index
    %34 = vector.load %arg2[%33, %c0_15, %c0_16] : memref<8x16x64xbf16, #tpu.memory_space<vmem>>, vector<1x16x64xbf16>
    %35 = vector.shape_cast %34 : vector<1x16x64xbf16> to vector<16x64xbf16>
    %36 = arith.truncf %16 : vector<16x128xf32> to vector<16x128xbf16>
    %cst_17 = arith.constant dense<0.000000e+00> : vector<16x256xf32>
    %37 = tpu.matmul %35, %3, %cst_17 {dimension_numbers = #tpu.dot_dimension_numbers<[1], [0], [0], [1], [0, 0, 1, 1], [], []>} : vector<16x64xbf16>, vector<64x256xbf16>, vector<16x256xf32> -> vector<16x256xf32>
    %cst_18 = arith.constant dense<0.000000e+00> : vector<16x256xf32>
    %38 = tpu.matmul %36, %4, %cst_18 {dimension_numbers = #tpu.dot_dimension_numbers<[1], [0], [0], [1], [0, 0, 1, 1], [], []>} : vector<16x128xbf16>, vector<128x256xbf16>, vector<16x256xf32> -> vector<16x256xf32>
    %39 = arith.addf %37, %38 : vector<16x256xf32>
    %40 = vector.broadcast %5 : vector<1x256xf32> to vector<16x256xf32>
    %41 = arith.addf %39, %40 : vector<16x256xf32>
    %42 = vector.extract_strided_slice %41 {offsets = [0, 0], sizes = [16, 128], strides = [1, 1]} : vector<16x256xf32> to vector<16x128xf32>
    %43 = vector.extract_strided_slice %41 {offsets = [0, 128], sizes = [16, 128], strides = [1, 1]} : vector<16x256xf32> to vector<16x128xf32>
    %cst_19 = arith.constant dense<0xFF800000> : vector<16xf32>
    %44 = vector.multi_reduction <maximumf>, %43, %cst_19 [1] : vector<16x128xf32> to vector<16xf32>
    %45 = vector.shape_cast %44 : vector<16xf32> to vector<16x1xf32>
    %46 = vector.broadcast %45 : vector<16x1xf32> to vector<16x128xf32>
    %47 = arith.subf %43, %46 : vector<16x128xf32>
    %48 = math.exp %47 : vector<16x128xf32>
    %cst_20 = arith.constant dense<0.000000e+00> : vector<16xf32>
    %49 = vector.multi_reduction <add>, %48, %cst_20 [1] : vector<16x128xf32> to vector<16xf32>
    %50 = vector.shape_cast %49 : vector<16xf32> to vector<16x1xf32>
    %51 = math.log %50 : vector<16x1xf32>
    %52 = vector.broadcast %51 : vector<16x1xf32> to vector<16x128xf32>
    %53 = arith.subf %47, %52 : vector<16x128xf32>
    %54 = arith.truncf %53 : vector<16x128xf32> to vector<16x128xbf16>
    %55 = arith.index_cast %c1_i32 : i32 to index
    %c0_21 = arith.constant 0 : index
    %c0_22 = arith.constant 0 : index
    %56 = vector.load %arg6[%55, %c0_21, %c0_22] : memref<8x16x128xbf16, #tpu.memory_space<vmem>>, vector<1x16x128xbf16>
    %57 = vector.shape_cast %56 : vector<1x16x128xbf16> to vector<16x128xbf16>
    %58 = vector.shape_cast %54 : vector<16x128xbf16> to vector<1x16x128xbf16>
    tpu.vector_store %arg6[%55, %c0_21, %c0_22], %58 {strides = array<i32>} : memref<8x16x128xbf16, #tpu.memory_space<vmem>>, vector<1x16x128xbf16>,
    %c2_i32 = arith.constant 2 : i32
    %59 = arith.index_cast %c2_i32 : i32 to index
    %c0_23 = arith.constant 0 : index
    %c0_24 = arith.constant 0 : index
    %60 = vector.load %arg2[%59, %c0_23, %c0_24] : memref<8x16x64xbf16, #tpu.memory_space<vmem>>, vector<1x16x64xbf16>
    %61 = vector.shape_cast %60 : vector<1x16x64xbf16> to vector<16x64xbf16>
    %62 = arith.truncf %42 : vector<16x128xf32> to vector<16x128xbf16>
    %cst_25 = arith.constant dense<0.000000e+00> : vector<16x256xf32>
    %63 = tpu.matmul %61, %3, %cst_25 {dimension_numbers = #tpu.dot_dimension_numbers<[1], [0], [0], [1], [0, 0, 1, 1], [], []>} : vector<16x64xbf16>, vector<64x256xbf16>, vector<16x256xf32> -> vector<16x256xf32>
    %cst_26 = arith.constant dense<0.000000e+00> : vector<16x256xf32>
    %64 = tpu.matmul %62, %4, %cst_26 {dimension_numbers = #tpu.dot_dimension_numbers<[1], [0], [0], [1], [0, 0, 1, 1], [], []>} : vector<16x128xbf16>, vector<128x256xbf16>, vector<16x256xf32> -> vector<16x256xf32>
    %65 = arith.addf %63, %64 : vector<16x256xf32>
    %66 = vector.broadcast %5 : vector<1x256xf32> to vector<16x256xf32>
    %67 = arith.addf %65, %66 : vector<16x256xf32>
    %68 = vector.extract_strided_slice %67 {offsets = [0, 0], sizes = [16, 128], strides = [1, 1]} : vector<16x256xf32> to vector<16x128xf32>
    %69 = vector.extract_strided_slice %67 {offsets = [0, 128], sizes = [16, 128], strides = [1, 1]} : vector<16x256xf32> to vector<16x128xf32>
    %cst_27 = arith.constant dense<0xFF800000> : vector<16xf32>
    %70 = vector.multi_reduction <maximumf>, %69, %cst_27 [1] : vector<16x128xf32> to vector<16xf32>
    %71 = vector.shape_cast %70 : vector<16xf32> to vector<16x1xf32>
    %72 = vector.broadcast %71 : vector<16x1xf32> to vector<16x128xf32>
    %73 = arith.subf %69, %72 : vector<16x128xf32>
    %74 = math.exp %73 : vector<16x128xf32>
    %cst_28 = arith.constant dense<0.000000e+00> : vector<16xf32>
    %75 = vector.multi_reduction <add>, %74, %cst_28 [1] : vector<16x128xf32> to vector<16xf32>
    %76 = vector.shape_cast %75 : vector<16xf32> to vector<16x1xf32>
    %77 = math.log %76 : vector<16x1xf32>
    %78 = vector.broadcast %77 : vector<16x1xf32> to vector<16x128xf32>
    %79 = arith.subf %73, %78 : vector<16x128xf32>
    %80 = arith.truncf %79 : vector<16x128xf32> to vector<16x128xbf16>
    %81 = arith.index_cast %c2_i32 : i32 to index
    %c0_29 = arith.constant 0 : index
    %c0_30 = arith.constant 0 : index
    %82 = vector.load %arg6[%81, %c0_29, %c0_30] : memref<8x16x128xbf16, #tpu.memory_space<vmem>>, vector<1x16x128xbf16>
    %83 = vector.shape_cast %82 : vector<1x16x128xbf16> to vector<16x128xbf16>
    %84 = vector.shape_cast %80 : vector<16x128xbf16> to vector<1x16x128xbf16>
    tpu.vector_store %arg6[%81, %c0_29, %c0_30], %84 {strides = array<i32>} : memref<8x16x128xbf16, #tpu.memory_space<vmem>>, vector<1x16x128xbf16>,
    %c3_i32 = arith.constant 3 : i32
    %85 = arith.index_cast %c3_i32 : i32 to index
    %c0_31 = arith.constant 0 : index
    %c0_32 = arith.constant 0 : index
    %86 = vector.load %arg2[%85, %c0_31, %c0_32] : memref<8x16x64xbf16, #tpu.memory_space<vmem>>, vector<1x16x64xbf16>
    %87 = vector.shape_cast %86 : vector<1x16x64xbf16> to vector<16x64xbf16>
    %88 = arith.truncf %68 : vector<16x128xf32> to vector<16x128xbf16>
    %cst_33 = arith.constant dense<0.000000e+00> : vector<16x256xf32>
    %89 = tpu.matmul %87, %3, %cst_33 {dimension_numbers = #tpu.dot_dimension_numbers<[1], [0], [0], [1], [0, 0, 1, 1], [], []>} : vector<16x64xbf16>, vector<64x256xbf16>, vector<16x256xf32> -> vector<16x256xf32>
    %cst_34 = arith.constant dense<0.000000e+00> : vector<16x256xf32>
    %90 = tpu.matmul %88, %4, %cst_34 {dimension_numbers = #tpu.dot_dimension_numbers<[1], [0], [0], [1], [0, 0, 1, 1], [], []>} : vector<16x128xbf16>, vector<128x256xbf16>, vector<16x256xf32> -> vector<16x256xf32>
    %91 = arith.addf %89, %90 : vector<16x256xf32>
    %92 = vector.broadcast %5 : vector<1x256xf32> to vector<16x256xf32>
    %93 = arith.addf %91, %92 : vector<16x256xf32>
    %94 = vector.extract_strided_slice %93 {offsets = [0, 0], sizes = [16, 128], strides = [1, 1]} : vector<16x256xf32> to vector<16x128xf32>
    %95 = vector.extract_strided_slice %93 {offsets = [0, 128], sizes = [16, 128], strides = [1, 1]} : vector<16x256xf32> to vector<16x128xf32>
    %cst_35 = arith.constant dense<0xFF800000> : vector<16xf32>
    %96 = vector.multi_reduction <maximumf>, %95, %cst_35 [1] : vector<16x128xf32> to vector<16xf32>
    %97 = vector.shape_cast %96 : vector<16xf32> to vector<16x1xf32>
    %98 = vector.broadcast %97 : vector<16x1xf32> to vector<16x128xf32>
    %99 = arith.subf %95, %98 : vector<16x128xf32>
    %100 = math.exp %99 : vector<16x128xf32>
    %cst_36 = arith.constant dense<0.000000e+00> : vector<16xf32>
    %101 = vector.multi_reduction <add>, %100, %cst_36 [1] : vector<16x128xf32> to vector<16xf32>
    %102 = vector.shape_cast %101 : vector<16xf32> to vector<16x1xf32>
    %103 = math.log %102 : vector<16x1xf32>
    %104 = vector.broadcast %103 : vector<16x1xf32> to vector<16x128xf32>
    %105 = arith.subf %99, %104 : vector<16x128xf32>
    %106 = arith.truncf %105 : vector<16x128xf32> to vector<16x128xbf16>
    %107 = arith.index_cast %c3_i32 : i32 to index
    %c0_37 = arith.constant 0 : index
    %c0_38 = arith.constant 0 : index
    %108 = vector.load %arg6[%107, %c0_37, %c0_38] : memref<8x16x128xbf16, #tpu.memory_space<vmem>>, vector<1x16x128xbf16>
    %109 = vector.shape_cast %108 : vector<1x16x128xbf16> to vector<16x128xbf16>
    %110 = vector.shape_cast %106 : vector<16x128xbf16> to vector<1x16x128xbf16>
    tpu.vector_store %arg6[%107, %c0_37, %c0_38], %110 {strides = array<i32>} : memref<8x16x128xbf16, #tpu.memory_space<vmem>>, vector<1x16x128xbf16>,
    %c4_i32 = arith.constant 4 : i32
    %111 = arith.index_cast %c4_i32 : i32 to index
    %c0_39 = arith.constant 0 : index
    %c0_40 = arith.constant 0 : index
    %112 = vector.load %arg2[%111, %c0_39, %c0_40] : memref<8x16x64xbf16, #tpu.memory_space<vmem>>, vector<1x16x64xbf16>
    %113 = vector.shape_cast %112 : vector<1x16x64xbf16> to vector<16x64xbf16>
    %114 = arith.truncf %94 : vector<16x128xf32> to vector<16x128xbf16>
    %cst_41 = arith.constant dense<0.000000e+00> : vector<16x256xf32>
    %115 = tpu.matmul %113, %3, %cst_41 {dimension_numbers = #tpu.dot_dimension_numbers<[1], [0], [0], [1], [0, 0, 1, 1], [], []>} : vector<16x64xbf16>, vector<64x256xbf16>, vector<16x256xf32> -> vector<16x256xf32>
    %cst_42 = arith.constant dense<0.000000e+00> : vector<16x256xf32>
    %116 = tpu.matmul %114, %4, %cst_42 {dimension_numbers = #tpu.dot_dimension_numbers<[1], [0], [0], [1], [0, 0, 1, 1], [], []>} : vector<16x128xbf16>, vector<128x256xbf16>, vector<16x256xf32> -> vector<16x256xf32>
    %117 = arith.addf %115, %116 : vector<16x256xf32>
    %118 = vector.broadcast %5 : vector<1x256xf32> to vector<16x256xf32>
    %119 = arith.addf %117, %118 : vector<16x256xf32>
    %120 = vector.extract_strided_slice %119 {offsets = [0, 0], sizes = [16, 128], strides = [1, 1]} : vector<16x256xf32> to vector<16x128xf32>
    %121 = vector.extract_strided_slice %119 {offsets = [0, 128], sizes = [16, 128], strides = [1, 1]} : vector<16x256xf32> to vector<16x128xf32>
    %cst_43 = arith.constant dense<0xFF800000> : vector<16xf32>
    %122 = vector.multi_reduction <maximumf>, %121, %cst_43 [1] : vector<16x128xf32> to vector<16xf32>
    %123 = vector.shape_cast %122 : vector<16xf32> to vector<16x1xf32>
    %124 = vector.broadcast %123 : vector<16x1xf32> to vector<16x128xf32>
    %125 = arith.subf %121, %124 : vector<16x128xf32>
    %126 = math.exp %125 : vector<16x128xf32>
    %cst_44 = arith.constant dense<0.000000e+00> : vector<16xf32>
    %127 = vector.multi_reduction <add>, %126, %cst_44 [1] : vector<16x128xf32> to vector<16xf32>
    %128 = vector.shape_cast %127 : vector<16xf32> to vector<16x1xf32>
    %129 = math.log %128 : vector<16x1xf32>
    %130 = vector.broadcast %129 : vector<16x1xf32> to vector<16x128xf32>
    %131 = arith.subf %125, %130 : vector<16x128xf32>
    %132 = arith.truncf %131 : vector<16x128xf32> to vector<16x128xbf16>
    %133 = arith.index_cast %c4_i32 : i32 to index
    %c0_45 = arith.constant 0 : index
    %c0_46 = arith.constant 0 : index
    %134 = vector.load %arg6[%133, %c0_45, %c0_46] : memref<8x16x128xbf16, #tpu.memory_space<vmem>>, vector<1x16x128xbf16>
    %135 = vector.shape_cast %134 : vector<1x16x128xbf16> to vector<16x128xbf16>
    %136 = vector.shape_cast %132 : vector<16x128xbf16> to vector<1x16x128xbf16>
    tpu.vector_store %arg6[%133, %c0_45, %c0_46], %136 {strides = array<i32>} : memref<8x16x128xbf16, #tpu.memory_space<vmem>>, vector<1x16x128xbf16>,
    %c5_i32 = arith.constant 5 : i32
    %137 = arith.index_cast %c5_i32 : i32 to index
    %c0_47 = arith.constant 0 : index
    %c0_48 = arith.constant 0 : index
    %138 = vector.load %arg2[%137, %c0_47, %c0_48] : memref<8x16x64xbf16, #tpu.memory_space<vmem>>, vector<1x16x64xbf16>
    %139 = vector.shape_cast %138 : vector<1x16x64xbf16> to vector<16x64xbf16>
    %140 = arith.truncf %120 : vector<16x128xf32> to vector<16x128xbf16>
    %cst_49 = arith.constant dense<0.000000e+00> : vector<16x256xf32>
    %141 = tpu.matmul %139, %3, %cst_49 {dimension_numbers = #tpu.dot_dimension_numbers<[1], [0], [0], [1], [0, 0, 1, 1], [], []>} : vector<16x64xbf16>, vector<64x256xbf16>, vector<16x256xf32> -> vector<16x256xf32>
    %cst_50 = arith.constant dense<0.000000e+00> : vector<16x256xf32>
    %142 = tpu.matmul %140, %4, %cst_50 {dimension_numbers = #tpu.dot_dimension_numbers<[1], [0], [0], [1], [0, 0, 1, 1], [], []>} : vector<16x128xbf16>, vector<128x256xbf16>, vector<16x256xf32> -> vector<16x256xf32>
    %143 = arith.addf %141, %142 : vector<16x256xf32>
    %144 = vector.broadcast %5 : vector<1x256xf32> to vector<16x256xf32>
    %145 = arith.addf %143, %144 : vector<16x256xf32>
    %146 = vector.extract_strided_slice %145 {offsets = [0, 0], sizes = [16, 128], strides = [1, 1]} : vector<16x256xf32> to vector<16x128xf32>
    %147 = vector.extract_strided_slice %145 {offsets = [0, 128], sizes = [16, 128], strides = [1, 1]} : vector<16x256xf32> to vector<16x128xf32>
    %cst_51 = arith.constant dense<0xFF800000> : vector<16xf32>
    %148 = vector.multi_reduction <maximumf>, %147, %cst_51 [1] : vector<16x128xf32> to vector<16xf32>
    %149 = vector.shape_cast %148 : vector<16xf32> to vector<16x1xf32>
    %150 = vector.broadcast %149 : vector<16x1xf32> to vector<16x128xf32>
    %151 = arith.subf %147, %150 : vector<16x128xf32>
    %152 = math.exp %151 : vector<16x128xf32>
    %cst_52 = arith.constant dense<0.000000e+00> : vector<16xf32>
    %153 = vector.multi_reduction <add>, %152, %cst_52 [1] : vector<16x128xf32> to vector<16xf32>
    %154 = vector.shape_cast %153 : vector<16xf32> to vector<16x1xf32>
    %155 = math.log %154 : vector<16x1xf32>
    %156 = vector.broadcast %155 : vector<16x1xf32> to vector<16x128xf32>
    %157 = arith.subf %151, %156 : vector<16x128xf32>
    %158 = arith.truncf %157 : vector<16x128xf32> to vector<16x128xbf16>
    %159 = arith.index_cast %c5_i32 : i32 to index
    %c0_53 = arith.constant 0 : index
    %c0_54 = arith.constant 0 : index
    %160 = vector.load %arg6[%159, %c0_53, %c0_54] : memref<8x16x128xbf16, #tpu.memory_space<vmem>>, vector<1x16x128xbf16>
    %161 = vector.shape_cast %160 : vector<1x16x128xbf16> to vector<16x128xbf16>
    %162 = vector.shape_cast %158 : vector<16x128xbf16> to vector<1x16x128xbf16>
    tpu.vector_store %arg6[%159, %c0_53, %c0_54], %162 {strides = array<i32>} : memref<8x16x128xbf16, #tpu.memory_space<vmem>>, vector<1x16x128xbf16>,
    %c6_i32 = arith.constant 6 : i32
    %163 = arith.index_cast %c6_i32 : i32 to index
    %c0_55 = arith.constant 0 : index
    %c0_56 = arith.constant 0 : index
    %164 = vector.load %arg2[%163, %c0_55, %c0_56] : memref<8x16x64xbf16, #tpu.memory_space<vmem>>, vector<1x16x64xbf16>
    %165 = vector.shape_cast %164 : vector<1x16x64xbf16> to vector<16x64xbf16>
    %166 = arith.truncf %146 : vector<16x128xf32> to vector<16x128xbf16>
    %cst_57 = arith.constant dense<0.000000e+00> : vector<16x256xf32>
    %167 = tpu.matmul %165, %3, %cst_57 {dimension_numbers = #tpu.dot_dimension_numbers<[1], [0], [0], [1], [0, 0, 1, 1], [], []>} : vector<16x64xbf16>, vector<64x256xbf16>, vector<16x256xf32> -> vector<16x256xf32>
    %cst_58 = arith.constant dense<0.000000e+00> : vector<16x256xf32>
    %168 = tpu.matmul %166, %4, %cst_58 {dimension_numbers = #tpu.dot_dimension_numbers<[1], [0], [0], [1], [0, 0, 1, 1], [], []>} : vector<16x128xbf16>, vector<128x256xbf16>, vector<16x256xf32> -> vector<16x256xf32>
    %169 = arith.addf %167, %168 : vector<16x256xf32>
    %170 = vector.broadcast %5 : vector<1x256xf32> to vector<16x256xf32>
    %171 = arith.addf %169, %170 : vector<16x256xf32>
    %172 = vector.extract_strided_slice %171 {offsets = [0, 0], sizes = [16, 128], strides = [1, 1]} : vector<16x256xf32> to vector<16x128xf32>
    %173 = vector.extract_strided_slice %171 {offsets = [0, 128], sizes = [16, 128], strides = [1, 1]} : vector<16x256xf32> to vector<16x128xf32>
    %cst_59 = arith.constant dense<0xFF800000> : vector<16xf32>
    %174 = vector.multi_reduction <maximumf>, %173, %cst_59 [1] : vector<16x128xf32> to vector<16xf32>
    %175 = vector.shape_cast %174 : vector<16xf32> to vector<16x1xf32>
    %176 = vector.broadcast %175 : vector<16x1xf32> to vector<16x128xf32>
    %177 = arith.subf %173, %176 : vector<16x128xf32>
    %178 = math.exp %177 : vector<16x128xf32>
    %cst_60 = arith.constant dense<0.000000e+00> : vector<16xf32>
    %179 = vector.multi_reduction <add>, %178, %cst_60 [1] : vector<16x128xf32> to vector<16xf32>
    %180 = vector.shape_cast %179 : vector<16xf32> to vector<16x1xf32>
    %181 = math.log %180 : vector<16x1xf32>
    %182 = vector.broadcast %181 : vector<16x1xf32> to vector<16x128xf32>
    %183 = arith.subf %177, %182 : vector<16x128xf32>
    %184 = arith.truncf %183 : vector<16x128xf32> to vector<16x128xbf16>
    %185 = arith.index_cast %c6_i32 : i32 to index
    %c0_61 = arith.constant 0 : index
    %c0_62 = arith.constant 0 : index
    %186 = vector.load %arg6[%185, %c0_61, %c0_62] : memref<8x16x128xbf16, #tpu.memory_space<vmem>>, vector<1x16x128xbf16>
    %187 = vector.shape_cast %186 : vector<1x16x128xbf16> to vector<16x128xbf16>
    %188 = vector.shape_cast %184 : vector<16x128xbf16> to vector<1x16x128xbf16>
    tpu.vector_store %arg6[%185, %c0_61, %c0_62], %188 {strides = array<i32>} : memref<8x16x128xbf16, #tpu.memory_space<vmem>>, vector<1x16x128xbf16>,
    %c7_i32 = arith.constant 7 : i32
    %189 = arith.index_cast %c7_i32 : i32 to index
    %c0_63 = arith.constant 0 : index
    %c0_64 = arith.constant 0 : index
    %190 = vector.load %arg2[%189, %c0_63, %c0_64] : memref<8x16x64xbf16, #tpu.memory_space<vmem>>, vector<1x16x64xbf16>
    %191 = vector.shape_cast %190 : vector<1x16x64xbf16> to vector<16x64xbf16>
    %192 = arith.truncf %172 : vector<16x128xf32> to vector<16x128xbf16>
    %cst_65 = arith.constant dense<0.000000e+00> : vector<16x256xf32>
    %193 = tpu.matmul %191, %3, %cst_65 {dimension_numbers = #tpu.dot_dimension_numbers<[1], [0], [0], [1], [0, 0, 1, 1], [], []>} : vector<16x64xbf16>, vector<64x256xbf16>, vector<16x256xf32> -> vector<16x256xf32>
    %cst_66 = arith.constant dense<0.000000e+00> : vector<16x256xf32>
    %194 = tpu.matmul %192, %4, %cst_66 {dimension_numbers = #tpu.dot_dimension_numbers<[1], [0], [0], [1], [0, 0, 1, 1], [], []>} : vector<16x128xbf16>, vector<128x256xbf16>, vector<16x256xf32> -> vector<16x256xf32>
    %195 = arith.addf %193, %194 : vector<16x256xf32>
    %196 = vector.broadcast %5 : vector<1x256xf32> to vector<16x256xf32>
    %197 = arith.addf %195, %196 : vector<16x256xf32>
    %198 = vector.extract_strided_slice %197 {offsets = [0, 0], sizes = [16, 128], strides = [1, 1]} : vector<16x256xf32> to vector<16x128xf32>
    %199 = vector.extract_strided_slice %197 {offsets = [0, 128], sizes = [16, 128], strides = [1, 1]} : vector<16x256xf32> to vector<16x128xf32>
    %cst_67 = arith.constant dense<0xFF800000> : vector<16xf32>
    %200 = vector.multi_reduction <maximumf>, %199, %cst_67 [1] : vector<16x128xf32> to vector<16xf32>
    %201 = vector.shape_cast %200 : vector<16xf32> to vector<16x1xf32>
    %202 = vector.broadcast %201 : vector<16x1xf32> to vector<16x128xf32>
    %203 = arith.subf %199, %202 : vector<16x128xf32>
    %204 = math.exp %203 : vector<16x128xf32>
    %cst_68 = arith.constant dense<0.000000e+00> : vector<16xf32>
    %205 = vector.multi_reduction <add>, %204, %cst_68 [1] : vector<16x128xf32> to vector<16xf32>
    %206 = vector.shape_cast %205 : vector<16xf32> to vector<16x1xf32>
    %207 = math.log %206 : vector<16x1xf32>
    %208 = vector.broadcast %207 : vector<16x1xf32> to vector<16x128xf32>
    %209 = arith.subf %203, %208 : vector<16x128xf32>
    %210 = arith.truncf %209 : vector<16x128xf32> to vector<16x128xbf16>
    %211 = arith.index_cast %c7_i32 : i32 to index
    %c0_69 = arith.constant 0 : index
    %c0_70 = arith.constant 0 : index
    %212 = vector.load %arg6[%211, %c0_69, %c0_70] : memref<8x16x128xbf16, #tpu.memory_space<vmem>>, vector<1x16x128xbf16>
    %213 = vector.shape_cast %212 : vector<1x16x128xbf16> to vector<16x128xbf16>
    %214 = vector.shape_cast %210 : vector<16x128xbf16> to vector<1x16x128xbf16>
    tpu.vector_store %arg6[%211, %c0_69, %c0_70], %214 {strides = array<i32>} : memref<8x16x128xbf16, #tpu.memory_space<vmem>>, vector<1x16x128xbf16>,
    %c8_i32 = arith.constant 8 : i32
    %c0_71 = arith.constant 0 : index
    %c0_72 = arith.constant 0 : index
    %215 = vector.load %arg8[%c0_71, %c0_72] : memref<16x128xf32, #tpu.memory_space<vmem>>, vector<16x128xf32>
    tpu.vector_store %arg8[%c0_71, %c0_72], %198 {strides = array<i32>} : memref<16x128xf32, #tpu.memory_space<vmem>>, vector<16x128xf32>,
    %c0_i32_73 = arith.constant 0 : i32
    %216 = arith.cmpi eq, %arg1, %c0_i32_73 : i32
    %217 = arith.extui %216 : i1 to i32
    %c0_i32_74 = arith.constant 0 : i32
    %218 = arith.cmpi ne, %217, %c0_i32_74 : i32
    scf.if %218 {
      %c0_75 = arith.constant 0 : index
      %c0_76 = arith.constant 0 : index
      %219 = vector.load %arg8[%c0_75, %c0_76] : memref<16x128xf32, #tpu.memory_space<vmem>>, vector<16x128xf32>
      %c0_77 = arith.constant 0 : index
      %c0_78 = arith.constant 0 : index
      %220 = vector.load %arg7[%c0_77, %c0_78] : memref<16x128xf32, #tpu.memory_space<vmem>>, vector<16x128xf32>
      tpu.vector_store %arg7[%c0_77, %c0_78], %219 {strides = array<i32>} : memref<16x128xf32, #tpu.memory_space<vmem>>, vector<16x128xf32>,
    } else {
    }
    return
  }
  func.func @transform_0(%arg0: i32, %arg1: i32) -> (i32, i32, i32) {
    %c0_i32 = arith.constant 0 : i32
    %c0_i32_0 = arith.constant 0 : i32
    return %arg1, %arg0, %c0_i32 : i32, i32, i32
  }
  func.func @transform_1(%arg0: i32, %arg1: i32) -> (i32, i32) {
    %c0_i32 = arith.constant 0 : i32
    %c0_i32_0 = arith.constant 0 : i32
    return %arg0, %c0_i32 : i32, i32
  }
  func.func @transform_2(%arg0: i32, %arg1: i32) -> (i32, i32) {
    %c0_i32 = arith.constant 0 : i32
    %c0_i32_0 = arith.constant 0 : i32
    %c0_i32_1 = arith.constant 0 : i32
    return %c0_i32, %c0_i32_0 : i32, i32
  }
  func.func @transform_3(%arg0: i32, %arg1: i32) -> (i32, i32) {
    %c0_i32 = arith.constant 0 : i32
    %c0_i32_0 = arith.constant 0 : i32
    %c0_i32_1 = arith.constant 0 : i32
    return %c0_i32, %c0_i32_0 : i32, i32
  }
  func.func @transform_4(%arg0: i32, %arg1: i32) -> (i32, i32, i32) {
    %c0_i32 = arith.constant 0 : i32
    %c0_i32_0 = arith.constant 0 : i32
    return %arg1, %arg0, %c0_i32 : i32, i32, i32
  }
  func.func @transform_5(%arg0: i32, %arg1: i32) -> (i32, i32) {
    %c0_i32 = arith.constant 0 : i32
    %c0_i32_0 = arith.constant 0 : i32
    return %arg0, %c0_i32 : i32, i32
  }
}

</mosaic_0001>

<bundles_post_ra>
// kernel: tpu_custom_call.1
= control target key start
LH: loop header
LB: loop body
LE: loop exit
PB: predicated region body
PF: predicated region fallthrough
CT: control target
= control target key end

     0   :  { %11 = vsyncpa [#allocation4], 0  ;;  %s2261_s0 = inlined_call_operand.hbm [shape: bf16[8,16,64], index: 0, kind: input, shape index: {}]   ;;  %s2262_s1 = inlined_call_operand.hbm [shape: f32[16,128], index: 1, kind: input, shape index: {}]   ;;  %s2263_s2 = inlined_call_operand.hbm [shape: bf16[192,256], index: 2, kind: input, shape index: {}]   ;;  %s2264_s3 = inlined_call_operand.vmem [shape: f32[1,256], index: 3, kind: input, shape index: {}]   ;;  %s2265_s4 = inlined_call_operand.hbm [shape: bf16[8,16,128], index: 4, kind: output, shape index: {0}]   ;;  %s2266_s5 = inlined_call_operand.hbm [shape: f32[16,128], index: 5, kind: output, shape index: {1}]  }
   0x1   :  { %12 = vsyncpa [#allocation7], 0 }
   0x2   :  { %13 = vsyncpa [#allocation5], 0 }
   0x3   :  { %14 = vsyncpa [#allocation11], 0  ;;  %s1715_s18 = smov [#allocation6]   ;;  %s1597_s22 = scalar_lea.hbm %s2262_s1, 256 }
   0x4   :  { %s32_s19 = sshll.u32 %s1715_s18, 4  ;;  %p1598_p0 = scmp.ne.s32.totalorder %s2262_s1, %s1597_s22  ;;  %s33_s19 = int_to_ptr.vmem [resolvable:$true] %s32_s19 }
   0x5   :  { %p1601_p1 = scmp.lt.u32.totalorder %s1597_s22, %s2262_s1 }
   0x7   :  { %p1603_p2 = pnand %p1601_p1, %p1598_p0 }
   0x9   :  { %1606 = shalt.err (!%p1603_p2)
}
   0xa   :  { %s1607_s27 = scalar_lea.vmem %s33_s19, 256  ;;  %p1612_p4 = scmp.lt.s32.totalorder %s33_s19, %s33_s19 }
   0xb   :  { %p1608_p3 = scmp.ne.s32.totalorder %s33_s19, %s1607_s27  ;;  %p1613_p5 = scmp.lt.s32.totalorder %s1607_s27, %s1607_s27 }
   0xd   :  { %p1614_p6 = por %p1613_p5, %p1612_p4 }
   0xf   :  { %p1615_p7 = pnand %p1614_p6, %p1608_p3 }
  0x11   :  { %1618 = shalt.err (!%p1615_p7)
}
  0x12   :  { %s1716_s28 = smov 128   ;;  %s1717_s29 = smov 8  }
  0x13   :  { %38 = dma.hbm_to_vmem [thread:$0]  %s2262_s1, 256, %s33_s19, [#allocation7], %s1716_s28, %s1716_s28, %s1717_s29  }
  0x14   :  { %s1718_s7 = smov [#allocation3]   ;;  %s1619_s11 = scalar_lea.hbm %s2261_s0, 1024 }
  0x15   :  { %s20_s8 = sshll.u32 %s1718_s7, 4  ;;  %p1620_p8 = scmp.ne.s32.totalorder %s2261_s0, %s1619_s11  ;;  %s21_s8 = int_to_ptr.vmem [resolvable:$true] %s20_s8 }
  0x16   :  { %p1623_p9 = scmp.lt.u32.totalorder %s1619_s11, %s2261_s0 }
  0x18   :  { %p1625_p10 = pnand %p1623_p9, %p1620_p8 }
  0x1a   :  { %1628 = shalt.err (!%p1625_p10)
}
  0x1b   :  { %s1629_s16 = scalar_lea.vmem %s21_s8, 1024  ;;  %p1634_p12 = scmp.lt.s32.totalorder %s21_s8, %s21_s8 }
  0x1c   :  { %p1630_p11 = scmp.ne.s32.totalorder %s21_s8, %s1629_s16  ;;  %p1635_p13 = scmp.lt.s32.totalorder %s1629_s16, %s1629_s16 }
  0x1e   :  { %p1636_p0 = por %p1635_p13, %p1634_p12 }
  0x20   :  { %p1637_p1 = pnand %p1636_p0, %p1630_p11 }
  0x22   :  { %1640 = shalt.err (!%p1637_p1)
}
  0x23   :  { %s1719_s1 = smov 64   ;;  %s1720_s17 = smov 4  }
  0x24   :  { %26 = dma.hbm_to_vmem [thread:$0]  %s2261_s0, 1024, %s21_s8, [#allocation4], %s1719_s1, %s1719_s1, %s1720_s17  }
  0x25   :  { %s1721_s20 = smov [#allocation8]   ;;  %s1641_s24 = scalar_lea.hbm %s2263_s2, 3072 }
  0x26   :  { %s44_s21 = sshll.u32 %s1721_s20, 4  ;;  %p1642_p2 = scmp.ne.s32.totalorder %s2263_s2, %s1641_s24  ;;  %s45_s21 = int_to_ptr.vmem [resolvable:$true] %s44_s21 }
  0x27   :  { %p1645_p3 = scmp.lt.u32.totalorder %s1641_s24, %s2263_s2 }
  0x29   :  { %p1647_p4 = pnand %p1645_p3, %p1642_p2 }
  0x2b   :  { %1650 = shalt.err (!%p1647_p4)
}
  0x2c   :  { %s1651_s6 = scalar_lea.vmem %s45_s21, 3072  ;;  %p1656_p6 = scmp.lt.s32.totalorder %s45_s21, %s45_s21 }
  0x2d   :  { %p1652_p5 = scmp.ne.s32.totalorder %s45_s21, %s1651_s6  ;;  %p1657_p7 = scmp.lt.s32.totalorder %s1651_s6, %s1651_s6 }
  0x2f   :  { %p1658_p8 = por %p1657_p7, %p1656_p6 }
  0x31   :  { %p1659_p9 = pnand %p1658_p8, %p1652_p5 }
  0x33   :  { %1662 = shalt.err (!%p1659_p9)
}
  0x34   :  { %50 = dma.hbm_to_vmem [thread:$0]  %s2263_s2, 3072, %s45_s21, [#allocation7], %s1716_s28, %s1716_s28, %s1717_s29  }
  0x35   :  { %1707 = dma.done.wait [#allocation4], 1024  }
  0x36   :  { %1708 = vsyncadd [#allocation4], 4294966272 }
  0x37   :  { %1709 = dma.done.wait [#allocation7], 3328  }
  0x38   :  { %1710 = vsyncadd [#allocation7], 4294963968  ;;  %v1722_v0 = vmov 0   ;;  %v1802_v1 = vld [vmem:[#allocation8 + $0x44] ss:$8 sps:$4 sm:$0xff]   ;;  %v67_v17 = vld [vmem:[#allocation6] sm:$0xff]  ;;  %v317_v29 = vlaneseq }
  0x39   :  { %213 = vmatprep.mubr.bf16.mxu0 %v1722_v0  ;;  %397 = vmatprep.mubr.bf16.mxu1 %v1722_v0  ;;  %v1804_v2 = vld [vmem:[#allocation8 + $0x40] ss:$8 sps:$4 sm:$0xff]   ;;  %v1807_v3 = vld [vmem:[#allocation8 + $0x54] ss:$8 sps:$4 sm:$0xff]   ;;  %v1811_v4 = vld [vmem:[#allocation8 + $0x50] ss:$8 sps:$4 sm:$0xff]  }
  0x3a   :  { %181 = vmatprep.subr.bf16.mxu0 %v1802_v1  ;;  %365 = vmatprep.subr.bf16.mxu1 %v1802_v1  ;;  %v1815_v5 = vld [vmem:[#allocation8 + $0x64] ss:$8 sps:$4 sm:$0xff]   ;;  %v1819_v6 = vld [vmem:[#allocation8 + $0x60] ss:$8 sps:$4 sm:$0xff]   ;;  %v1823_v7 = vld [vmem:[#allocation8 + $0x74] ss:$8 sps:$4 sm:$0xff]  }
  0x3b   :  { %182 = vmatpush1.bf16.msra.mxu0 %v1804_v2  ;;  %366 = vmatpush1.bf16.msra.mxu1 %v1804_v2  ;;  %v1827_v8 = vld [vmem:[#allocation8 + $0x70] ss:$8 sps:$4 sm:$0xff]   ;;  %v1831_v9 = vld [vmem:[#allocation8 + $0x84] ss:$8 sps:$4 sm:$0xff]   ;;  %v1835_v10 = vld [vmem:[#allocation8 + $0x80] ss:$8 sps:$4 sm:$0xff]  }
  0x3c   :  { %183 = vmatprep.subr.bf16.mxu0 %v1807_v3  ;;  %367 = vmatprep.subr.bf16.mxu1 %v1807_v3  ;;  %v1839_v11 = vld [vmem:[#allocation8 + $0x94] ss:$8 sps:$4 sm:$0xff]   ;;  %v1842_v12 = vld [vmem:[#allocation8 + $0x90] ss:$8 sps:$4 sm:$0xff]   ;;  %v1844_v13 = vld [vmem:[#allocation8 + $0xa4] ss:$8 sps:$4 sm:$0xff]  }
  0x3d   :  { %v1851_v14 = vld [vmem:[#allocation8 + $0xa0] ss:$8 sps:$4 sm:$0xff]   ;;  %v1855_v15 = vld [vmem:[#allocation8 + $0xb4] ss:$8 sps:$4 sm:$0xff]   ;;  %v1859_v16 = vld [vmem:[#allocation8 + $0xb0] ss:$8 sps:$4 sm:$0xff]  }
  0x3e   :  { %v68_v18 = vld [vmem:[#allocation6 + $0x8] sm:$0xff]  ;;  %v1863_v19 = vld [vmem:[#allocation8 + $0x4] ss:$8 sps:$4 sm:$0xff]   ;;  %v1867_v21 = vld [vmem:[#allocation8] ss:$8 sps:$4 sm:$0xff]   ;;  %vm269_vm0 = vcmask 523264  }
  0x3f   :  { %184 = vmatpush1.bf16.msra.mxu0 %v1811_v4  ;;  %368 = vmatpush1.bf16.msra.mxu1 %v1811_v4  ;;  %v100_v20 = vpack.c.bf16 %v68_v18, %v67_v17  ;;  %v1871_v22 = vld [vmem:[#allocation8 + $0x14] ss:$8 sps:$4 sm:$0xff]   ;;  %v1875_v23 = vld [vmem:[#allocation8 + $0x10] ss:$8 sps:$4 sm:$0xff]   ;;  %v1879_v24 = vld [vmem:[#allocation8 + $0x24] ss:$8 sps:$4 sm:$0xff]  }
  0x40   :  { %185 = vmatprep.subr.bf16.mxu0 %v1815_v5  ;;  %369 = vmatprep.subr.bf16.mxu1 %v1815_v5  ;;  %v1882_v25 = vld [vmem:[#allocation8 + $0x20] ss:$8 sps:$4 sm:$0xff]   ;;  %v1885_v26 = vld [vmem:[#allocation8 + $0x34] ss:$8 sps:$4 sm:$0xff]   ;;  %v1888_v27 = vld [vmem:[#allocation8 + $0x30] ss:$8 sps:$4 sm:$0xff]  }
  0x41   :  { %v1525_v28 = vld [vmem:[#allocation3] sm:$0xff]   ;;  %v318_v30 = vshrl.u32 %v317_v29, 7  ;;  %v1526_v45 = vld [vmem:[#allocation3 + $0x8] sm:$0xff]   ;;  %v1527_v55 = vld [vmem:[#allocation3 + $0x10] sm:$0xff]  }
  0x42   :  { %v95_v32 = vld [vmem:[%s2264_s3] sm:$0x3]  ;;  %v1528_v18 = vld [vmem:[#allocation3 + $0x18] sm:$0xff]   ;;  %s1723_s3 = smov [#allocation10]  }
  0x43   :  { %186 = vmatpush1.bf16.msra.mxu0 %v1819_v6  ;;  %370 = vmatpush1.bf16.msra.mxu1 %v1819_v6  ;;  %v323_v31 = vsub.s32 1, %v318_v30  ;;  %v319_v33 = vsub.s32 0, %v318_v30  ;;  %s1318_s9 = sshll.u32 %s1723_s3, 4  ;;  %s1319_s9 = int_to_ptr.vmem [resolvable:$true] %s1318_s9 }
  0x44   :  { %187 = vmatprep.subr.bf16.mxu0 %v1823_v7  ;;  %371 = vmatprep.subr.bf16.mxu1 %v1823_v7  ;;  %s1663_s10 = scalar_lea.vmem %s1319_s9, 256  ;;  %p1668_p11 = scmp.lt.s32.totalorder %s1319_s9, %s1319_s9 }
  0x45   :  { %v1914_v34 = vrot.slane %v95_v32, %v323_v31  ;;  %v1916_v35 = vrot.slane %v95_v32, %v319_v33  ;;  %p1664_p10 = scmp.ne.s32.totalorder %s1319_s9, %s1663_s10  ;;  %p1669_p12 = scmp.lt.s32.totalorder %s1663_s10, %s1663_s10 }
  0x47   :  { %188 = vmatpush1.bf16.msra.mxu0 %v1827_v8  ;;  %372 = vmatpush1.bf16.msra.mxu1 %v1827_v8  ;;  %p1670_p13 = por %p1669_p12, %p1668_p11 }
  0x48   :  { %189 = vmatprep.subr.bf16.mxu0 %v1831_v9  ;;  %373 = vmatprep.subr.bf16.mxu1 %v1831_v9 }
  0x49   :  { %p1671_p0 = pnand %p1670_p13, %p1664_p10 }
  0x4b   :  { %190 = vmatpush1.bf16.msra.mxu0 %v1835_v10  ;;  %374 = vmatpush1.bf16.msra.mxu1 %v1835_v10 }
  0x4c   :  { %191 = vmatprep.subr.bf16.mxu0 %v1839_v11  ;;  %375 = vmatprep.subr.bf16.mxu1 %v1839_v11 }
  0x4f   :  { %192 = vmatpush1.bf16.msra.mxu0 %v1842_v12  ;;  %376 = vmatpush1.bf16.msra.mxu1 %v1842_v12 }
  0x50   :  { %193 = vmatprep.subr.bf16.mxu0 %v1844_v13  ;;  %377 = vmatprep.subr.bf16.mxu1 %v1844_v13 }
  0x53   :  { %194 = vmatpush1.bf16.msra.mxu0 %v1851_v14  ;;  %378 = vmatpush1.bf16.msra.mxu1 %v1851_v14 }
  0x54   :  { %195 = vmatprep.subr.bf16.mxu0 %v1855_v15  ;;  %379 = vmatprep.subr.bf16.mxu1 %v1855_v15 }
  0x57   :  { %196 = vmatpush1.bf16.msra.mxu0 %v1859_v16  ;;  %380 = vmatpush1.bf16.msra.mxu1 %v1859_v16 }
  0x58   :  { %273 = vmatprep.subr.bf16.mxu0 %v1863_v19  ;;  %416 = vmatprep.subr.bf16.mxu1 %v1863_v19 }
  0x5a   :  { %214 = vmatmul.mubr.bf16.vlgmr.msra.gmra.mrb[0].mxu0 %v100_v20 }
  0x5b   :  { %274 = vmatpush1.bf16.msra.mxu0 %v1867_v21  ;;  %305 = vmatprep.mubr.bf16.mxu0 %v1722_v0 }
  0x5c   :  { %275 = vmatprep.subr.bf16.mxu0 %v1871_v22 }
  0x5f   :  { %276 = vmatpush1.bf16.msra.mxu0 %v1875_v23 }
  0x60   :  { %277 = vmatprep.subr.bf16.mxu0 %v1879_v24 }
  0x63   :  { %278 = vmatpush1.bf16.msra.mxu0 %v1882_v25 }
  0x64   :  { %279 = vmatprep.subr.bf16.mxu0 %v1885_v26 }
  0x67   :  { %280 = vmatpush1.bf16.msra.mxu0 %v1888_v27 }
  0x68   :  { %498 = vmatprep.subr.bf16.mxu0 %v1802_v1 }
  0x6a   :  { %1360 = vmatmul.mubr.msk.bf16.vlgmr.msra.gmra.mrb[0].mxu0 %vm269_vm0, %v1525_v28 }
  0x6b   :  { %499 = vmatpush1.bf16.msra.mxu0 %v1804_v2  ;;  %530 = vmatprep.mubr.bf16.mxu0 %v1722_v0 }
  0x6c   :  { %500 = vmatprep.subr.bf16.mxu0 %v1807_v3 }
  0x6f   :  { %501 = vmatpush1.bf16.msra.mxu0 %v1811_v4 }
  0x70   :  { %502 = vmatprep.subr.bf16.mxu0 %v1815_v5 }
  0x73   :  { %503 = vmatpush1.bf16.msra.mxu0 %v1819_v6 }
  0x74   :  { %504 = vmatprep.subr.bf16.mxu0 %v1823_v7 }
  0x77   :  { %505 = vmatpush1.bf16.msra.mxu0 %v1827_v8 }
  0x78   :  { %506 = vmatprep.subr.bf16.mxu0 %v1831_v9 }
  0x7b   :  { %507 = vmatpush1.bf16.msra.mxu0 %v1835_v10 }
  0x7c   :  { %508 = vmatprep.subr.bf16.mxu0 %v1839_v11 }
  0x7f   :  { %509 = vmatpush1.bf16.msra.mxu0 %v1842_v12 }
  0x80   :  { %510 = vmatprep.subr.bf16.mxu0 %v1844_v13 }
  0x83   :  { %511 = vmatpush1.bf16.msra.mxu0 %v1851_v14 }
  0x84   :  { %512 = vmatprep.subr.bf16.mxu0 %v1855_v15 }
  0x87   :  { %513 = vmatpush1.bf16.msra.mxu0 %v1859_v16 }
  0x88   :  { %549 = vmatprep.subr.bf16.mxu0 %v1863_v19 }
 0x13d   :  { %v307_v36 = vpop.f32.mrb[0].mxu0 }
 0x13e   :  { %v309_v37 = vpop.f32.mrb[1].mxu0  ;;  %v327_v40 = vadd.f32 %v1916_v35, %v307_v36 }
 0x13f   :  { %v1919_v38 = vadd.f32 %v1914_v34, %v309_v37  ;;  %v311_v39 = vpop.f32.mrb[2].mxu0 }
 0x140   :  { %v329_v41 = vadd.f32 %v1916_v35, %v311_v39  ;;  %v313_v42 = vpop.f32.mrb[3].mxu0  ;;  %v1529_v39 = vld [vmem:[#allocation3 + $0x20] sm:$0xff]  }
 0x141   :  { %331 = vmax.xlane.f32.xlu0 %v1919_v38  ;;  %v1925_v44 = vadd.f32 %v1914_v34, %v313_v42 }
 0x142   :  { %v364_v43 = vpack.c.bf16 %v329_v41, %v327_v40 }
 0x144   :  { %398 = vmatmul.mubr.bf16.vlgmr.msra.gmra.mrb[0].mxu1 %v364_v43 }
 0x145   :  { %417 = vmatpush1.bf16.msra.mxu1 %v1867_v21  ;;  %333 = vmax.xlane.f32.xlu0 %v1925_v44 }
 0x146   :  { %418 = vmatprep.subr.bf16.mxu1 %v1871_v22  ;;  %448 = vmatprep.mubr.bf16.mxu1 %v1722_v0 }
 0x149   :  { %419 = vmatpush1.bf16.msra.mxu1 %v1875_v23 }
 0x14a   :  { %420 = vmatprep.subr.bf16.mxu1 %v1879_v24 }
 0x14d   :  { %421 = vmatpush1.bf16.msra.mxu1 %v1882_v25 }
 0x14e   :  { %422 = vmatprep.subr.bf16.mxu1 %v1885_v26 }
 0x151   :  { %423 = vmatpush1.bf16.msra.mxu1 %v1888_v27 }
 0x152   :  { %631 = vmatprep.subr.bf16.mxu1 %v1802_v1 }
 0x154   :  { %1364 = vmatmul.mubr.msk.bf16.vlgmr.msra.gmra.mrb[0].mxu1 %vm269_vm0, %v1526_v45 }
 0x155   :  { %632 = vmatpush1.bf16.msra.mxu1 %v1804_v2  ;;  %663 = vmatprep.mubr.bf16.mxu1 %v1722_v0 }
 0x156   :  { %633 = vmatprep.subr.bf16.mxu1 %v1807_v3 }
 0x159   :  { %634 = vmatpush1.bf16.msra.mxu1 %v1811_v4 }
 0x15a   :  { %635 = vmatprep.subr.bf16.mxu1 %v1815_v5 }
 0x15d   :  { %636 = vmatpush1.bf16.msra.mxu1 %v1819_v6 }
 0x15e   :  { %637 = vmatprep.subr.bf16.mxu1 %v1823_v7 }
 0x161   :  { %638 = vmatpush1.bf16.msra.mxu1 %v1827_v8 }
 0x162   :  { %639 = vmatprep.subr.bf16.mxu1 %v1831_v9 }
 0x165   :  { %640 = vmatpush1.bf16.msra.mxu1 %v1835_v10 }
 0x166   :  { %641 = vmatprep.subr.bf16.mxu1 %v1839_v11 }
 0x169   :  { %642 = vmatpush1.bf16.msra.mxu1 %v1842_v12 }
 0x16a   :  { %643 = vmatprep.subr.bf16.mxu1 %v1844_v13 }
 0x16d   :  { %644 = vmatpush1.bf16.msra.mxu1 %v1851_v14 }
 0x16e   :  { %645 = vmatprep.subr.bf16.mxu1 %v1855_v15 }
 0x171   :  { %646 = vmatpush1.bf16.msra.mxu1 %v1859_v16 }
 0x172   :  { %682 = vmatprep.subr.bf16.mxu1 %v1863_v19 }
 0x227   :  { %v450_v46 = vpop.f32.mrb[0].mxu1 }
 0x228   :  { %v452_v47 = vpop.f32.mrb[1].mxu1  ;;  %v459_v50 = vadd.f32 %v450_v46, %v1916_v35 }
 0x229   :  { %v1956_v48 = vadd.f32 %v452_v47, %v1914_v34  ;;  %v454_v49 = vpop.f32.mrb[2].mxu1 }
 0x22a   :  { %v461_v51 = vadd.f32 %v454_v49, %v1916_v35  ;;  %v456_v52 = vpop.f32.mrb[3].mxu1 }
 0x22b   :  { %463 = vmax.xlane.f32.xlu1 %v1956_v48  ;;  %v1962_v54 = vadd.f32 %v456_v52, %v1914_v34 }
 0x22c   :  { %v497_v53 = vpack.c.bf16 %v461_v51, %v459_v50  ;;  %v1530_v51 = vld [vmem:[#allocation3 + $0x28] sm:$0xff]  }
 0x22e   :  { %531 = vmatmul.mubr.bf16.vlgmr.msra.gmra.mrb[4].mxu0 %v497_v53 }
 0x22f   :  { %550 = vmatpush1.bf16.msra.mxu0 %v1867_v21  ;;  %465 = vmax.xlane.f32.xlu1 %v1962_v54 }
 0x230   :  { %551 = vmatprep.subr.bf16.mxu0 %v1871_v22  ;;  %581 = vmatprep.mubr.bf16.mxu0 %v1722_v0 }
 0x233   :  { %552 = vmatpush1.bf16.msra.mxu0 %v1875_v23 }
 0x234   :  { %553 = vmatprep.subr.bf16.mxu0 %v1879_v24 }
 0x237   :  { %554 = vmatpush1.bf16.msra.mxu0 %v1882_v25 }
 0x238   :  { %555 = vmatprep.subr.bf16.mxu0 %v1885_v26 }
 0x23b   :  { %556 = vmatpush1.bf16.msra.mxu0 %v1888_v27 }
 0x23c   :  { %764 = vmatprep.subr.bf16.mxu0 %v1802_v1 }
 0x23e   :  { %1368 = vmatmul.mubr.msk.bf16.vlgmr.msra.gmra.mrb[4].mxu0 %vm269_vm0, %v1527_v55  ;;  %v1532_v55 = vld [vmem:[#allocation3 + $0x38] sm:$0xff]  }
 0x23f   :  { %765 = vmatpush1.bf16.msra.mxu0 %v1804_v2  ;;  %796 = vmatprep.mubr.bf16.mxu0 %v1722_v0 }
 0x240   :  { %766 = vmatprep.subr.bf16.mxu0 %v1807_v3 }
 0x243   :  { %767 = vmatpush1.bf16.msra.mxu0 %v1811_v4 }
 0x244   :  { %768 = vmatprep.subr.bf16.mxu0 %v1815_v5 }
 0x247   :  { %769 = vmatpush1.bf16.msra.mxu0 %v1819_v6 }
 0x248   :  { %770 = vmatprep.subr.bf16.mxu0 %v1823_v7 }
 0x24b   :  { %771 = vmatpush1.bf16.msra.mxu0 %v1827_v8 }
 0x24c   :  { %772 = vmatprep.subr.bf16.mxu0 %v1831_v9 }
 0x24f   :  { %773 = vmatpush1.bf16.msra.mxu0 %v1835_v10 }
 0x250   :  { %774 = vmatprep.subr.bf16.mxu0 %v1839_v11 }
 0x253   :  { %775 = vmatpush1.bf16.msra.mxu0 %v1842_v12 }
 0x254   :  { %776 = vmatprep.subr.bf16.mxu0 %v1844_v13 }
 0x257   :  { %777 = vmatpush1.bf16.msra.mxu0 %v1851_v14 }
 0x258   :  { %778 = vmatprep.subr.bf16.mxu0 %v1855_v15 }
 0x25b   :  { %779 = vmatpush1.bf16.msra.mxu0 %v1859_v16 }
 0x25c   :  { %815 = vmatprep.subr.bf16.mxu0 %v1863_v19 }
 0x311   :  { %v583_v56 = vpop.f32.mrb[4].mxu0 }
 0x312   :  { %v585_v57 = vpop.f32.mrb[5].mxu0  ;;  %v592_v60 = vadd.f32 %v583_v56, %v1916_v35  ;;  %v332_v56 = vpop.xlane.xlu0 %331 }
 0x313   :  { %v1993_v58 = vadd.f32 %v585_v57, %v1914_v34  ;;  %v587_v59 = vpop.f32.mrb[6].mxu0  ;;  %v464_v57 = vpop.xlane.xlu1 %463 }
 0x314   :  { %v594_v61 = vadd.f32 %v587_v59, %v1916_v35  ;;  %v589_v62 = vpop.f32.mrb[7].mxu0 }
 0x315   :  { %v1998_v63 = vadd.f32 %v589_v62, %v1914_v34  ;;  %596 = vmax.xlane.f32.xlu0 %v1993_v58 }
 0x316   :  { %v630_v17 = vpack.c.bf16 %v594_v61, %v592_v60 }
 0x317   :  { %598 = vmax.xlane.f32.xlu1 %v1998_v63 }
 0x318   :  { %664 = vmatmul.mubr.bf16.vlgmr.msra.gmra.mrb[4].mxu1 %v630_v17 }
 0x319   :  { %683 = vmatpush1.bf16.msra.mxu1 %v1867_v21  ;;  %714 = vmatprep.mubr.bf16.mxu1 %v1722_v0 }
 0x31a   :  { %684 = vmatprep.subr.bf16.mxu1 %v1871_v22 }
 0x31d   :  { %685 = vmatpush1.bf16.msra.mxu1 %v1875_v23 }
 0x31e   :  { %686 = vmatprep.subr.bf16.mxu1 %v1879_v24 }
 0x321   :  { %687 = vmatpush1.bf16.msra.mxu1 %v1882_v25 }
 0x322   :  { %688 = vmatprep.subr.bf16.mxu1 %v1885_v26 }
 0x325   :  { %689 = vmatpush1.bf16.msra.mxu1 %v1888_v27 }
 0x326   :  { %897 = vmatprep.subr.bf16.mxu1 %v1802_v1 }
 0x328   :  { %1372 = vmatmul.mubr.msk.bf16.vlgmr.msra.gmra.mrb[4].mxu1 %vm269_vm0, %v1528_v18 }
 0x329   :  { %898 = vmatpush1.bf16.msra.mxu1 %v1804_v2  ;;  %929 = vmatprep.mubr.bf16.mxu1 %v1722_v0 }
 0x32a   :  { %899 = vmatprep.subr.bf16.mxu1 %v1807_v3 }
 0x32d   :  { %900 = vmatpush1.bf16.msra.mxu1 %v1811_v4 }
 0x32e   :  { %901 = vmatprep.subr.bf16.mxu1 %v1815_v5 }
 0x331   :  { %902 = vmatpush1.bf16.msra.mxu1 %v1819_v6 }
 0x332   :  { %903 = vmatprep.subr.bf16.mxu1 %v1823_v7 }
 0x335   :  { %904 = vmatpush1.bf16.msra.mxu1 %v1827_v8 }
 0x336   :  { %905 = vmatprep.subr.bf16.mxu1 %v1831_v9 }
 0x339   :  { %906 = vmatpush1.bf16.msra.mxu1 %v1835_v10 }
 0x33a   :  { %907 = vmatprep.subr.bf16.mxu1 %v1839_v11 }
 0x33d   :  { %908 = vmatpush1.bf16.msra.mxu1 %v1842_v12 }
 0x33e   :  { %909 = vmatprep.subr.bf16.mxu1 %v1844_v13 }
 0x341   :  { %910 = vmatpush1.bf16.msra.mxu1 %v1851_v14 }
 0x342   :  { %911 = vmatprep.subr.bf16.mxu1 %v1855_v15 }
 0x345   :  { %912 = vmatpush1.bf16.msra.mxu1 %v1859_v16 }
 0x346   :  { %948 = vmatprep.subr.bf16.mxu1 %v1863_v19 }
 0x3fb   :  { %v716_v20 = vpop.f32.mrb[4].mxu1 }
 0x3fc   :  { %v718_v28 = vpop.f32.mrb[5].mxu1  ;;  %v725_v31 = vadd.f32 %v716_v20, %v1916_v35 }
 0x3fd   :  { %v2030_v29 = vadd.f32 %v718_v28, %v1914_v34  ;;  %v720_v30 = vpop.f32.mrb[6].mxu1 }
 0x3fe   :  { %v727_v32 = vadd.f32 %v720_v30, %v1916_v35  ;;  %v722_v33 = vpop.f32.mrb[7].mxu1 }
 0x3ff   :  { %v2035_v36 = vadd.f32 %v722_v33, %v1914_v34  ;;  %729 = vmax.xlane.f32.xlu0 %v2030_v29 }
 0x400   :  { %v763_v37 = vpack.c.bf16 %v727_v32, %v725_v31 }
 0x401   :  { %731 = vmax.xlane.f32.xlu1 %v2035_v36 }
 0x402   :  { %797 = vmatmul.mubr.bf16.vlgmr.msra.gmra.mrb[8].mxu0 %v763_v37 }
 0x403   :  { %816 = vmatpush1.bf16.msra.mxu0 %v1867_v21  ;;  %847 = vmatprep.mubr.bf16.mxu0 %v1722_v0 }
 0x404   :  { %817 = vmatprep.subr.bf16.mxu0 %v1871_v22 }
 0x407   :  { %818 = vmatpush1.bf16.msra.mxu0 %v1875_v23 }
 0x408   :  { %819 = vmatprep.subr.bf16.mxu0 %v1879_v24 }
 0x40b   :  { %820 = vmatpush1.bf16.msra.mxu0 %v1882_v25 }
 0x40c   :  { %821 = vmatprep.subr.bf16.mxu0 %v1885_v26 }
 0x40f   :  { %822 = vmatpush1.bf16.msra.mxu0 %v1888_v27 }
 0x410   :  { %1030 = vmatprep.subr.bf16.mxu0 %v1802_v1 }
 0x412   :  { %1376 = vmatmul.mubr.msk.bf16.vlgmr.msra.gmra.mrb[8].mxu0 %vm269_vm0, %v1529_v39 }
 0x413   :  { %1031 = vmatpush1.bf16.msra.mxu0 %v1804_v2  ;;  %1062 = vmatprep.mubr.bf16.mxu0 %v1722_v0 }
 0x414   :  { %1032 = vmatprep.subr.bf16.mxu0 %v1807_v3 }
 0x417   :  { %1033 = vmatpush1.bf16.msra.mxu0 %v1811_v4 }
 0x418   :  { %1034 = vmatprep.subr.bf16.mxu0 %v1815_v5 }
 0x41b   :  { %1035 = vmatpush1.bf16.msra.mxu0 %v1819_v6 }
 0x41c   :  { %1036 = vmatprep.subr.bf16.mxu0 %v1823_v7 }
 0x41f   :  { %1037 = vmatpush1.bf16.msra.mxu0 %v1827_v8 }
 0x420   :  { %1038 = vmatprep.subr.bf16.mxu0 %v1831_v9 }
 0x423   :  { %1039 = vmatpush1.bf16.msra.mxu0 %v1835_v10 }
 0x424   :  { %1040 = vmatprep.subr.bf16.mxu0 %v1839_v11 }
 0x427   :  { %1041 = vmatpush1.bf16.msra.mxu0 %v1842_v12 }
 0x428   :  { %1042 = vmatprep.subr.bf16.mxu0 %v1844_v13 }
 0x42b   :  { %1043 = vmatpush1.bf16.msra.mxu0 %v1851_v14 }
 0x42c   :  { %1044 = vmatprep.subr.bf16.mxu0 %v1855_v15 }
 0x42f   :  { %1045 = vmatpush1.bf16.msra.mxu0 %v1859_v16 }
 0x430   :  { %1081 = vmatprep.subr.bf16.mxu0 %v1863_v19 }
 0x4e5   :  { %v849_v40 = vpop.f32.mrb[8].mxu0 }
 0x4e6   :  { %v851_v41 = vpop.f32.mrb[9].mxu0  ;;  %v858_v45 = vadd.f32 %v849_v40, %v1916_v35 }
 0x4e7   :  { %v2067_v42 = vadd.f32 %v851_v41, %v1914_v34  ;;  %v853_v43 = vpop.f32.mrb[10].mxu0 }
 0x4e8   :  { %v860_v46 = vadd.f32 %v853_v43, %v1916_v35  ;;  %v855_v47 = vpop.f32.mrb[11].mxu0 }
 0x4e9   :  { %v2072_v49 = vadd.f32 %v855_v47, %v1914_v34  ;;  %862 = vmax.xlane.f32.xlu0 %v2067_v42 }
 0x4ea   :  { %v896_v50 = vpack.c.bf16 %v860_v46, %v858_v45 }
 0x4eb   :  { %864 = vmax.xlane.f32.xlu1 %v2072_v49 }
 0x4ec   :  { %930 = vmatmul.mubr.bf16.vlgmr.msra.gmra.mrb[8].mxu1 %v896_v50 }
 0x4ed   :  { %949 = vmatpush1.bf16.msra.mxu1 %v1867_v21  ;;  %980 = vmatprep.mubr.bf16.mxu1 %v1722_v0 }
 0x4ee   :  { %950 = vmatprep.subr.bf16.mxu1 %v1871_v22 }
 0x4f1   :  { %951 = vmatpush1.bf16.msra.mxu1 %v1875_v23 }
 0x4f2   :  { %952 = vmatprep.subr.bf16.mxu1 %v1879_v24 }
 0x4f5   :  { %953 = vmatpush1.bf16.msra.mxu1 %v1882_v25 }
 0x4f6   :  { %954 = vmatprep.subr.bf16.mxu1 %v1885_v26 }
 0x4f9   :  { %955 = vmatpush1.bf16.msra.mxu1 %v1888_v27 }
 0x4fa   :  { %1163 = vmatprep.subr.bf16.mxu1 %v1802_v1 }
 0x4fc   :  { %1380 = vmatmul.mubr.msk.bf16.vlgmr.msra.gmra.mrb[8].mxu1 %vm269_vm0, %v1530_v51 }
 0x4fd   :  { %1164 = vmatpush1.bf16.msra.mxu1 %v1804_v2  ;;  %1195 = vmatprep.mubr.bf16.mxu1 %v1722_v0 }
 0x4fe   :  { %1165 = vmatprep.subr.bf16.mxu1 %v1807_v3 }
 0x501   :  { %1166 = vmatpush1.bf16.msra.mxu1 %v1811_v4 }
 0x502   :  { %1167 = vmatprep.subr.bf16.mxu1 %v1815_v5 }
 0x505   :  { %1168 = vmatpush1.bf16.msra.mxu1 %v1819_v6 }
 0x506   :  { %1169 = vmatprep.subr.bf16.mxu1 %v1823_v7 }
 0x509   :  { %1170 = vmatpush1.bf16.msra.mxu1 %v1827_v8 }
 0x50a   :  { %1171 = vmatprep.subr.bf16.mxu1 %v1831_v9 }
 0x50d   :  { %1172 = vmatpush1.bf16.msra.mxu1 %v1835_v10  ;;  %v1531_v10 = vld [vmem:[#allocation3 + $0x30] sm:$0xff]  }
 0x50e   :  { %1173 = vmatprep.subr.bf16.mxu1 %v1839_v11 }
 0x511   :  { %1174 = vmatpush1.bf16.msra.mxu1 %v1842_v12 }
 0x512   :  { %1175 = vmatprep.subr.bf16.mxu1 %v1844_v13 }
 0x515   :  { %1176 = vmatpush1.bf16.msra.mxu1 %v1851_v14 }
 0x516   :  { %1177 = vmatprep.subr.bf16.mxu1 %v1855_v15 }
 0x519   :  { %1178 = vmatpush1.bf16.msra.mxu1 %v1859_v16 }
 0x51a   :  { %1214 = vmatprep.subr.bf16.mxu1 %v1863_v19 }
 0x5cf   :  { %v982_v1 = vpop.f32.mrb[8].mxu1 }
 0x5d0   :  { %v984_v2 = vpop.f32.mrb[9].mxu1  ;;  %v991_v5 = vadd.f32 %v982_v1, %v1916_v35 }
 0x5d1   :  { %v2104_v3 = vadd.f32 %v984_v2, %v1914_v34  ;;  %v986_v4 = vpop.f32.mrb[10].mxu1 }
 0x5d2   :  { %v993_v6 = vadd.f32 %v986_v4, %v1916_v35  ;;  %v988_v7 = vpop.f32.mrb[11].mxu1 }
 0x5d3   :  { %v2109_v8 = vadd.f32 %v988_v7, %v1914_v34  ;;  %995 = vmax.xlane.f32.xlu0 %v2104_v3 }
 0x5d4   :  { %v1029_v9 = vpack.c.bf16 %v993_v6, %v991_v5 }
 0x5d5   :  { %997 = vmax.xlane.f32.xlu1 %v2109_v8 }
 0x5d6   :  { %1063 = vmatmul.mubr.bf16.vlgmr.msra.gmra.mrb[12].mxu0 %v1029_v9 }
 0x5d7   :  { %1082 = vmatpush1.bf16.msra.mxu0 %v1867_v21  ;;  %1113 = vmatprep.mubr.bf16.mxu0 %v1722_v0 }
 0x5d8   :  { %1083 = vmatprep.subr.bf16.mxu0 %v1871_v22 }
 0x5db   :  { %1084 = vmatpush1.bf16.msra.mxu0 %v1875_v23 }
 0x5dc   :  { %1085 = vmatprep.subr.bf16.mxu0 %v1879_v24 }
 0x5df   :  { %1086 = vmatpush1.bf16.msra.mxu0 %v1882_v25 }
 0x5e0   :  { %1087 = vmatprep.subr.bf16.mxu0 %v1885_v26 }
 0x5e3   :  { %1088 = vmatpush1.bf16.msra.mxu0 %v1888_v27 }
 0x5e6   :  { %1384 = vmatmul.mubr.msk.bf16.vlgmr.msra.gmra.mrb[12].mxu0 %vm269_vm0, %v1531_v10 }
 0x6b9   :  { %v1115_v11 = vpop.f32.mrb[12].mxu0 }
 0x6ba   :  { %v1117_v12 = vpop.f32.mrb[13].mxu0  ;;  %v1124_v15 = vadd.f32 %v1115_v11, %v1916_v35 }
 0x6bb   :  { %v2123_v13 = vadd.f32 %v1117_v12, %v1914_v34  ;;  %v1119_v14 = vpop.f32.mrb[14].mxu0 }
 0x6bc   :  { %v1126_v16 = vadd.f32 %v1119_v14, %v1916_v35  ;;  %v1121_v19 = vpop.f32.mrb[15].mxu0 }
 0x6bd   :  { %v2128_v52 = vadd.f32 %v1121_v19, %v1914_v34  ;;  %1128 = vmax.xlane.f32.xlu0 %v2123_v13 }
 0x6be   :  { %v1162_v53 = vpack.c.bf16 %v1126_v16, %v1124_v15 }
 0x6bf   :  { %1130 = vmax.xlane.f32.xlu1 %v2128_v52 }
 0x6c0   :  { %1196 = vmatmul.mubr.bf16.vlgmr.msra.gmra.mrb[12].mxu1 %v1162_v53 }
 0x6c1   :  { %1215 = vmatpush1.bf16.msra.mxu1 %v1867_v21  ;;  %1246 = vmatprep.mubr.bf16.mxu1 %v1722_v0  ;;  %v334_v21 = vpop.xlane.xlu0 %333  ;;  %v2142_v0 = vsub.f32 %v1919_v38, %v332_v56 }
 0x6c2   :  { %1216 = vmatprep.subr.bf16.mxu1 %v1871_v22  ;;  %v2145_v22 = vsub.f32 %v1925_v44, %v334_v21 }
 0x6c5   :  { %1217 = vmatpush1.bf16.msra.mxu1 %v1875_v23  ;;  %v466_v23 = vpop.xlane.xlu1 %465 }
 0x6c6   :  { %1218 = vmatprep.subr.bf16.mxu1 %v1879_v24  ;;  %v337_v24 = vmul.f32 1.442695, %v2142_v0  ;;  %v2153_v59 = vsub.f32 %v1962_v54, %v466_v23 }
 0x6c8   :  { %1533 = vpow2.f32 %v337_v24  ;;  %v471_v62 = vmul.f32 1.442695, %v2153_v59 }
 0x6c9   :  { %1219 = vmatpush1.bf16.msra.mxu1 %v1882_v25  ;;  %v2149_v25 = vsub.f32 %v1956_v48, %v464_v57  ;;  %v599_v60 = vpop.xlane.xlu1 %598 }
 0x6ca   :  { %1220 = vmatprep.subr.bf16.mxu1 %v1885_v26  ;;  %v597_v26 = vpop.xlane.xlu0 %596  ;;  %v2161_v48 = vsub.f32 %v1998_v63, %v599_v60 }
 0x6cb   :  { %v469_v38 = vmul.f32 1.442695, %v2149_v25  ;;  %v2157_v61 = vsub.f32 %v1993_v58, %v597_v26 }
 0x6cc   :  { %v604_v63 = vmul.f32 1.442695, %v2161_v48 }
 0x6cd   :  { %1221 = vmatpush1.bf16.msra.mxu1 %v1888_v27  ;;  %v339_v27 = vmul.f32 1.442695, %v2145_v22  ;;  %v732_v17 = vpop.xlane.xlu1 %731  ;;  %v602_v54 = vmul.f32 1.442695, %v2157_v61 }
 0x6ce   :  { %v730_v44 = vpop.xlane.xlu0 %729  ;;  %v2173_v33 = vsub.f32 %v2035_v36, %v732_v17 }
 0x6cf   :  { %1535 = vpow2.f32 %v339_v27  ;;  %v2165_v20 = vsub.f32 %v2030_v29, %v730_v44 }
 0x6d0   :  { %1388 = vmatmul.mubr.msk.bf16.vlgmr.msra.gmra.mrb[12].mxu1 %vm269_vm0, %v1532_v55  ;;  %1537 = vpow2.f32 %v469_v38 }
 0x6d1   :  { %1539 = vpow2.f32 %v471_v62  ;;  %v865_v29 = vpop.xlane.xlu1 %864  ;;  %v735_v41 = vmul.f32 1.442695, %v2165_v20 }
 0x6d2   :  { %v863_v58 = vpop.xlane.xlu0 %862  ;;  %1541 = vpow2.f32 %v602_v54  ;;  %v1534_v36 = vpop.eup %1533  ;;  %v2187_v46 = vsub.f32 %v2072_v49, %v865_v29 }
 0x6d3   :  { %v2182_v43 = vsub.f32 %v2067_v42, %v863_v58  ;;  %1543 = vpow2.f32 %v604_v63 }
 0x6d4   :  { %1545 = vpow2.f32 %v735_v41  ;;  %v870_v2 = vmul.f32 1.442695, %v2187_v46 }
 0x6d5   :  { %v868_v50 = vmul.f32 1.442695, %v2182_v43 }
 0x6d6   :  { %v996_v45 = vpop.xlane.xlu0 %995 }
 0x6d7   :  { %v2191_v42 = vsub.f32 %v2104_v3, %v996_v45 }
 0x6d9   :  { %v1536_v47 = vpop.eup %1535  ;;  %v1001_v6 = vmul.f32 1.442695, %v2191_v42 }
 0x6da   :  { %v1538_v1 = vpop.eup %1537 }
 0x6db   :  { %v1540_v5 = vpop.eup %1539 }
 0x6dc   :  { %v1542_v3 = vpop.eup %1541 }
 0x74a   :  { %v1129_v51 = vpop.xlane.xlu0 %1128 }
 0x74b   :  { %v2199_v7 = vsub.f32 %v2123_v13, %v1129_v51 }
 0x74d   :  { %v1134_v11 = vmul.f32 1.442695, %v2199_v7 }
 0x7a3   :  { %v1248_v18 = vpop.f32.mrb[12].mxu1 }
 0x7a4   :  { %v1257_v28 = vadd.f32 %v1248_v18, %v1916_v35  ;;  %v1250_v30 = vpop.f32.mrb[13].mxu1 }
 0x7a5   :  { %v2169_v31 = vadd.f32 %v1250_v30, %v1914_v34  ;;  %v1252_v32 = vpop.f32.mrb[14].mxu1 }
 0x7a6   :  { %1299 = vst [vmem:[#allocation10] sm:$0xff] %v1257_v28  ;;  %v1259_v37 = vadd.f32 %v1252_v32, %v1916_v35  ;;  %v1254_v39 = vpop.f32.mrb[15].mxu1  ;;  %v737_v35 = vmul.f32 1.442695, %v2173_v33 }
 0x7a7   :  { %v2177_v40 = vadd.f32 %v1254_v39, %v1914_v34  ;;  %1261 = vmax.xlane.f32.xlu0 %v2169_v31  ;;  %v998_v34 = vpop.xlane.xlu1 %997 }
 0x7a8   :  { %1300 = vst [vmem:[#allocation10 + $0x8] sm:$0xff] %v1259_v37  ;;  %1547 = vpow2.f32 %v737_v35  ;;  %v2195_v4 = vsub.f32 %v2109_v8, %v998_v34  ;;  %v1544_v8 = vpop.eup %1543 }
 0x7a9   :  { %1263 = vmax.xlane.f32.xlu1 %v2177_v40  ;;  %1549 = vpow2.f32 %v868_v50  ;;  %v1546_v12 = vpop.eup %1545 }
 0x7aa   :  { %1551 = vpow2.f32 %v870_v2  ;;  %v1003_v9 = vmul.f32 1.442695, %v2195_v4 }
 0x7ab   :  { %341 = vadd.xlane.f32.xlu0 %v1534_v36  ;;  %v1131_v49 = vpop.xlane.xlu1 %1130  ;;  %1553 = vpow2.f32 %v1001_v6 }
 0x7ac   :  { %v2203_v10 = vsub.f32 %v2128_v52, %v1131_v49  ;;  %1555 = vpow2.f32 %v1003_v9 }
 0x7ad   :  { %343 = vadd.xlane.f32.xlu1 %v1536_v47  ;;  %1557 = vpow2.f32 %v1134_v11 }
 0x7ae   :  { %v1136_v14 = vmul.f32 1.442695, %v2203_v10 }
 0x7af   :  { %473 = vadd.xlane.f32.xlu0 %v1538_v1 }
 0x7b0   :  { %1559 = vpow2.f32 %v1136_v14 }
 0x7b1   :  { %475 = vadd.xlane.f32.xlu1 %v1540_v5 }
 0x7b2   :  { %v1548_v13 = vpop.eup %1547 }
 0x7b3   :  { %606 = vadd.xlane.f32.xlu0 %v1542_v3  ;;  %v1550_v15 = vpop.eup %1549 }
 0x7b4   :  { %v1552_v16 = vpop.eup %1551 }
 0x7b5   :  { %608 = vadd.xlane.f32.xlu1 %v1544_v8  ;;  %v1554_v19 = vpop.eup %1553 }
 0x7b6   :  { %v1556_v52 = vpop.eup %1555 }
 0x7b7   :  { %739 = vadd.xlane.f32.xlu0 %v1546_v12  ;;  %v1558_v53 = vpop.eup %1557 }
 0x7b9   :  { %741 = vadd.xlane.f32.xlu1 %v1548_v13 }
 0x7ba   :  { %v1560_v55 = vpop.eup %1559 }
 0x7bb   :  { %872 = vadd.xlane.f32.xlu0 %v1550_v15 }
 0x7bd   :  { %874 = vadd.xlane.f32.xlu1 %v1552_v16 }
 0x7bf   :  { %1005 = vadd.xlane.f32.xlu0 %v1554_v19 }
 0x7c1   :  { %1007 = vadd.xlane.f32.xlu1 %v1556_v52 }
 0x7c3   :  { %1138 = vadd.xlane.f32.xlu0 %v1558_v53 }
 0x7c5   :  { %1140 = vadd.xlane.f32.xlu1 %v1560_v55 }
 0x834   :  { %v1262_v56 = vpop.xlane.xlu0 %1261 }
 0x835   :  { %v2208_v57 = vsub.f32 %v2169_v31, %v1262_v56 }
 0x836   :  { %v1264_v21 = vpop.xlane.xlu1 %1263 }
 0x837   :  { %v1267_v23 = vmul.f32 1.442695, %v2208_v57  ;;  %v2212_v24 = vsub.f32 %v2177_v40, %v1264_v21 }
 0x838   :  { %v342_v26 = vpop.xlane.xlu0 %341 }
 0x839   :  { %1561 = vpow2.f32 %v1267_v23  ;;  %v1269_v27 = vmul.f32 1.442695, %v2212_v24 }
 0x83a   :  { %1563 = vlog2.f32 %v342_v26  ;;  %v344_v60 = vpop.xlane.xlu1 %343 }
 0x83b   :  { %1565 = vpow2.f32 %v1269_v27 }
 0x83c   :  { %1567 = vlog2.f32 %v344_v60  ;;  %v474_v38 = vpop.xlane.xlu0 %473 }
 0x83d   :  { %1569 = vlog2.f32 %v474_v38 }
 0x83e   :  { %v476_v44 = vpop.xlane.xlu1 %475 }
 0x83f   :  { %1571 = vlog2.f32 %v476_v44 }
 0x840   :  { %v607_v62 = vpop.xlane.xlu0 %606 }
 0x841   :  { %1573 = vlog2.f32 %v607_v62 }
 0x842   :  { %v609_v17 = vpop.xlane.xlu1 %608 }
 0x843   :  { %v1562_v18 = vpop.eup %1561  ;;  %1575 = vlog2.f32 %v609_v17 }
 0x844   :  { %v1564_v54 = vpop.eup %1563  ;;  %1271 = vadd.xlane.f32.xlu0 %v1562_v18  ;;  %v740_v28 = vpop.xlane.xlu0 %739 }
 0x845   :  { %v1566_v30 = vpop.eup %1565  ;;  %v346_v58 = vmul.f32 0.6931472, %v1564_v54  ;;  %1577 = vlog2.f32 %v740_v28 }
 0x846   :  { %v1568_v31 = vpop.eup %1567  ;;  %1273 = vadd.xlane.f32.xlu1 %v1566_v30  ;;  %v742_v32 = vpop.xlane.xlu1 %741 }
 0x847   :  { %v1570_v63 = vpop.eup %1569  ;;  %v348_v37 = vmul.f32 0.6931472, %v1568_v31  ;;  %1579 = vlog2.f32 %v742_v32  ;;  %v349_v41 = vsub.f32 %v2142_v0, %v346_v58 }
 0x848   :  { %v478_v39 = vmul.f32 0.6931472, %v1570_v63  ;;  %v873_v29 = vpop.xlane.xlu0 %872 }
 0x849   :  { %v1572_v40 = vpop.eup %1571  ;;  %v350_v45 = vsub.f32 %v2145_v22, %v348_v37  ;;  %1581 = vlog2.f32 %v873_v29 }
 0x84a   :  { %v480_v36 = vmul.f32 0.6931472, %v1572_v40  ;;  %v875_v35 = vpop.xlane.xlu1 %874  ;;  %v481_v50 = vsub.f32 %v2149_v25, %v478_v39 }
 0x84b   :  { %v1574_v34 = vpop.eup %1573  ;;  %v1410_v47 = vpack.c.bf16 %v350_v45, %v349_v41  ;;  %1583 = vlog2.f32 %v875_v35 }
 0x84c   :  { %v482_v51 = vsub.f32 %v2153_v59, %v480_v36  ;;  %v611_v1 = vmul.f32 0.6931472, %v1574_v34  ;;  %v1006_v2 = vpop.xlane.xlu0 %1005 }
 0x84d   :  { %v1576_v49 = vpop.eup %1575  ;;  %1411 = vst [vmem:[#allocation9] sm:$0xff] %v1410_v47   ;;  %1585 = vlog2.f32 %v1006_v2 }
 0x84e   :  { %v1415_v5 = vpack.c.bf16 %v482_v51, %v481_v50  ;;  %v613_v6 = vmul.f32 0.6931472, %v1576_v49  ;;  %v1008_v0 = vpop.xlane.xlu1 %1007  ;;  %v614_v22 = vsub.f32 %v2157_v61, %v611_v1 }
 0x84f   :  { %v1578_v3 = vpop.eup %1577  ;;  %1587 = vlog2.f32 %v1008_v0 }
 0x850   :  { %1416 = vst [vmem:[#allocation9 + $0x8] sm:$0xff] %v1415_v5   ;;  %v615_v9 = vsub.f32 %v2161_v48, %v613_v6  ;;  %v744_v8 = vmul.f32 0.6931472, %v1578_v3  ;;  %v1139_v11 = vpop.xlane.xlu0 %1138 }
 0x851   :  { %v1580_v25 = vpop.eup %1579  ;;  %1589 = vlog2.f32 %v1139_v11 }
 0x852   :  { %v1420_v59 = vpack.c.bf16 %v615_v9, %v614_v22  ;;  %v746_v12 = vmul.f32 0.6931472, %v1580_v25  ;;  %v1141_v14 = vpop.xlane.xlu1 %1140  ;;  %v747_v15 = vsub.f32 %v2165_v20, %v744_v8 }
 0x853   :  { %v1582_v13 = vpop.eup %1581  ;;  %1591 = vlog2.f32 %v1141_v14 }
 0x854   :  { %1421 = vst [vmem:[#allocation9 + $0x10] sm:$0xff] %v1420_v59   ;;  %v748_v16 = vsub.f32 %v2173_v33, %v746_v12  ;;  %v877_v19 = vmul.f32 0.6931472, %v1582_v13 }
 0x855   :  { %v1584_v52 = vpop.eup %1583 }
 0x856   :  { %v1425_v53 = vpack.c.bf16 %v748_v16, %v747_v15  ;;  %v879_v61 = vmul.f32 0.6931472, %v1584_v52  ;;  %v880_v48 = vsub.f32 %v2182_v43, %v877_v19 }
 0x857   :  { %v1586_v55 = vpop.eup %1585 }
 0x858   :  { %1426 = vst [vmem:[#allocation9 + $0x18] sm:$0xff] %v1425_v53   ;;  %v881_v56 = vsub.f32 %v2187_v46, %v879_v61  ;;  %v1010_v21 = vmul.f32 0.6931472, %v1586_v55 }
 0x859   :  { %v1588_v23 = vpop.eup %1587 }
 0x85a   :  { %v1430_v26 = vpack.c.bf16 %v881_v56, %v880_v48  ;;  %v1012_v27 = vmul.f32 0.6931472, %v1588_v23  ;;  %v1013_v20 = vsub.f32 %v2191_v42, %v1010_v21 }
 0x85b   :  { %v1590_v60 = vpop.eup %1589 }
 0x85c   :  { %1431 = vst [vmem:[#allocation9 + $0x20] sm:$0xff] %v1430_v26   ;;  %v1014_v33 = vsub.f32 %v2195_v4, %v1012_v27  ;;  %v1143_v38 = vmul.f32 0.6931472, %v1590_v60 }
 0x85d   :  { %v1592_v44 = vpop.eup %1591 }
 0x85e   :  { %v1435_v62 = vpack.c.bf16 %v1014_v33, %v1013_v20  ;;  %v1145_v17 = vmul.f32 0.6931472, %v1592_v44  ;;  %v1146_v18 = vsub.f32 %v2199_v7, %v1143_v38 }
 0x860   :  { %1436 = vst [vmem:[#allocation9 + $0x28] sm:$0xff] %v1435_v62   ;;  %v1147_v43 = vsub.f32 %v2203_v10, %v1145_v17 }
 0x862   :  { %v1440_v46 = vpack.c.bf16 %v1147_v43, %v1146_v18 }
 0x864   :  { %1441 = vst [vmem:[#allocation9 + $0x30] sm:$0xff] %v1440_v46  }
 0x865   :  { %1674 = shalt.err (!%p1671_p0)
}
 0x866   :  { %s1675_s13 = scalar_lea.hbm %s2266_s5, 256 }
 0x867   :  { %p1676_p1 = scmp.ne.s32.totalorder %s2266_s5, %s1675_s13  ;;  %p1679_p2 = scmp.lt.u32.totalorder %s1675_s13, %s2266_s5 }
 0x869   :  { %p1681_p3 = pnand %p1679_p2, %p1676_p1 }
 0x86b   :  { %1684 = shalt.err (!%p1681_p3)
}
 0x86c   :  { %1324 = dma.vmem_to_hbm [thread:$0]  %s1319_s9, 256, %s2266_s5, [#allocation11], %s1716_s28, %s1716_s28, %s1717_s29  }
 0x86d   :  { %s1724_s21 = smov [#allocation9]  }
 0x86e   :  { %s1306_s22 = sshll.u32 %s1724_s21, 4  ;;  %s1307_s22 = int_to_ptr.vmem [resolvable:$true] %s1306_s22 }
 0x86f   :  { %s1685_s23 = scalar_lea.vmem %s1307_s22, 1024  ;;  %p1690_p5 = scmp.lt.s32.totalorder %s1307_s22, %s1307_s22 }
 0x870   :  { %p1686_p4 = scmp.ne.s32.totalorder %s1307_s22, %s1685_s23  ;;  %p1691_p6 = scmp.lt.s32.totalorder %s1685_s23, %s1685_s23 }
 0x872   :  { %p1692_p7 = por %p1691_p6, %p1690_p5 }
 0x874   :  { %p1693_p8 = pnand %p1692_p7, %p1686_p4 }
 0x8d1   :  { %v1272_v42 = vpop.xlane.xlu0 %1271 }
 0x8d2   :  { %1593 = vlog2.f32 %v1272_v42 }
 0x8d3   :  { %v1274_v4 = vpop.xlane.xlu1 %1273 }
 0x8d4   :  { %1595 = vlog2.f32 %v1274_v4 }
 0x8dc   :  { %v1594_v7 = vpop.eup %1593 }
 0x8dd   :  { %v1276_v10 = vmul.f32 0.6931472, %v1594_v7 }
 0x8de   :  { %v1596_v54 = vpop.eup %1595 }
 0x8df   :  { %v1278_v28 = vmul.f32 0.6931472, %v1596_v54  ;;  %v1279_v30 = vsub.f32 %v2208_v57, %v1276_v10 }
 0x8e1   :  { %v1280_v58 = vsub.f32 %v2212_v24, %v1278_v28 }
 0x8e3   :  { %v1445_v31 = vpack.c.bf16 %v1280_v58, %v1279_v30 }
 0x8e5   :  { %1446 = vst [vmem:[#allocation9 + $0x38] sm:$0xff] %v1445_v31  }
 0x8e6   :  { %1696 = shalt.err (!%p1693_p8)
}
 0x8e7   :  { %s1697_s29 = scalar_lea.hbm %s2265_s4, 1024 }
 0x8e8   :  { %p1698_p9 = scmp.ne.s32.totalorder %s2265_s4, %s1697_s29  ;;  %p1701_p10 = scmp.lt.u32.totalorder %s1697_s29, %s2265_s4 }
 0x8ea   :  { %p1703_p11 = pnand %p1701_p10, %p1698_p9 }
 0x8ec   :  { %1706 = shalt.err (!%p1703_p11)
}
 0x8ed   :  { %1312 = dma.vmem_to_hbm [thread:$0]  %s1307_s22, 1024, %s2265_s4, [#allocation5], %s1719_s1, %s1719_s1, %s1720_s17  }
 0x8ee   :  { %1711 = dma.done.wait [#allocation5], 1024  }
 0x8ef   :  { %1712 = vsyncadd [#allocation5], 4294966272 }
 0x8f0   :  { %1713 = dma.done.wait [#allocation11], 256  }
 0x8f1   :  { %1714 = vsyncadd [#allocation11], 4294967040 }
 0x8f2   :  { %1331 = vsyncpa [#allocation4], 1 }
 0x8f3   :  { %1332 = vsyncpa [#allocation7], 1 }
 0x8f4   :  { %1333 = vsyncpa [#allocation5], 1 }
 0x8f5   :  { %1334 = vsyncpa [#allocation11], 1 }

</bundles_post_ra>
